<compile_context>
chip_gen: v7x
topology: tpu7x:2x2x1
jax: 0.10.0
libtpu: 0.0.40
codegen_flags: <defaults>
</compile_context>

<pallas_src>
import jax
import jax.numpy as jnp
import numpy as np
from jax.experimental import pallas as pl
from jax.experimental.pallas import tpu as pltpu


# ----------------------------------------------------------------------------
# Pallas kernel: full forward pass of SimpleRNN over the whole sequence.
# Gate layout on lanes (8H wide):  [L0: i|f|g|o  |  L1: i|f|g|o], g columns pre-scaled x2.
# ----------------------------------------------------------------------------
def simple_rnn_kernel(x_ref,        # (steps+1, 1) input sequence + one zero pad row
                      w_in_ref,     # (1, H)       input Linear weight^T
                      b_in_ref,     # (1, H)       input Linear bias
                      wx_pad_ref,   # (H, 8H)      [W0_ih^T | 0]          (g cols x2)
                      b_pad_ref,    # (1, 8H)      [b0      | b1]         (g cols x2)
                      wh0_ref,      # (H, 8H)      [W0_hh^T | W1_ih^T]    (g cols x2)
                      wh1_ref,      # (H, 8H)      [0       | W1_hh^T]    (g cols x2)
                      w_out_ref,    # (1, H)       output Linear weight (row)
                      b_out_ref,    # (1, 1)       output Linear bias
                      out_ref,      # (steps, 1)   outputs
                      h_out_ref,    # (2, 1, H)    final hidden state
                      c_out_ref):   # (2, 1, H)    final cell state
    H = w_in_ref.shape[1]
    steps = out_ref.shape[0]

    # --- Hoisted: input Linear + x-side gate pre-activations + fused biases --
    # One batched MXU matmul covers the x contribution of every step's layer-0
    # gates; the layer-1 half of each row is just b1 (wx_pad is zero there).
    inp_all = x_ref[...] * w_in_ref[...] + b_in_ref[...]              # (steps+1, H)
    xg_all = (jnp.dot(inp_all, wx_pad_ref[...],
                      preferred_element_type=jnp.float32)
              + b_pad_ref[...])                                       # (steps+1, 8H)

    wh0 = wh0_ref[...]                                                # (H, 8H)
    wh1 = wh1_ref[...]                                                # (H, 8H)

    def gate_split(sg, base):
        # Static lane slices; g recovered via tanh(z) = 2*sigmoid(2z) - 1.
        i = sg[:, base + 0 * H: base + 1 * H]
        f = sg[:, base + 1 * H: base + 2 * H]
        g = 2.0 * sg[:, base + 2 * H: base + 3 * H] - 1.0
        o = sg[:, base + 3 * H: base + 4 * H]
        return i, f, g, o

    # --- Prologue: layer-0, step 0 (h0_{-1}=c0_{-1}=0 -> no matmul needed) ---
    sg = jax.nn.sigmoid(xg_all[0:1, 0:4 * H])
    i0, f0, g0, o0 = gate_split(sg, 0)
    c0 = i0 * g0
    h0 = o0 * jnp.tanh(c0)

    h1 = jnp.zeros((1, H), jnp.float32)
    c1 = jnp.zeros((1, H), jnp.float32)
    h1_rows = []

    # --- Statically unrolled fused recurrence ---------------------------------
    # Iteration t computes layer-1(t) AND layer-0(t+1): both depend only on h0_t,
    # so a single h0-matmul feeds all 8 gates (one MXU push on the critical path).
    for t in range(steps):
        g = (jnp.dot(h0, wh0, preferred_element_type=jnp.float32)
             + xg_all[t + 1:t + 2, :])                                # (1, 8H)
        if t >= 1:  # h1_{-1} == 0, skip the dead matmul at t == 0
            g = g + jnp.dot(h1, wh1, preferred_element_type=jnp.float32)
        sg = jax.nn.sigmoid(g)                 # one EUP push for both cells' gates

        # layer-1, step t
        i1, f1, g1, o1 = gate_split(sg, 4 * H)
        c1 = f1 * c1 + i1 * g1
        h1 = o1 * jnp.tanh(c1)
        h1_rows.append(h1)

        # layer-0, step t+1 (skip the phantom step after the last input)
        if t + 1 < steps:
            i0, f0, g0, o0 = gate_split(sg, 0)
            c0 = f0 * c0 + i0 * g0
            h0 = o0 * jnp.tanh(c0)

    # --- Epilogue: output Linear(H,1) as VPU multiply + lane reduce, one store
    h1_all = jnp.concatenate(h1_rows, axis=0)                         # (steps, H)
    out_ref[...] = (jnp.sum(h1_all * w_out_ref[...], axis=-1, keepdims=True)
                    + b_out_ref[...])

    h_out_ref[0] = h0
    h_out_ref[1] = h1
    c_out_ref[0] = c0
    c_out_ref[1] = c1


# ----------------------------------------------------------------------------
# Wrapper: parameter repacking (glue) + pallas_call.
# ----------------------------------------------------------------------------
def simple_rnn_forward(inputs, params):
    """inputs: (steps, 1) f32.  Returns (outputs (steps,1,1), (h, c) each (2,1,H))."""
    steps = inputs.shape[0]
    H = params["hidden_size"]

    # Scale the g-gate columns (cols 2H:3H of an i|f|g|o block) by 2 so the kernel
    # can use a single sigmoid:  tanh(z) = 2*sigmoid(2z) - 1.
    g_col_scale = jnp.concatenate([jnp.ones((2 * H,), jnp.float32),
                                   2.0 * jnp.ones((H,), jnp.float32),
                                   jnp.ones((H,), jnp.float32)])

    def gscale(m):                        # m: (..., 4H)
        return m * g_col_scale

    # Input Linear(1, H).
    w_in_k = params["input_w"].T.reshape(1, H)                        # (1, H)
    b_in_k = params["input_b"].reshape(1, H)                          # (1, H)

    # PyTorch LSTM weights are (4H, H) with gate rows ordered i,f,g,o, so W^T is
    # (H, 4H) with gates i|f|g|o lane-ordered already.
    W0ih = gscale(params["w_ih_l0"].T)                                # (H, 4H)
    W0hh = gscale(params["w_hh_l0"].T)
    W1ih = gscale(params["w_ih_l1"].T)
    W1hh = gscale(params["w_hh_l1"].T)
    b0 = gscale((params["b_ih_l0"] + params["b_hh_l0"]).reshape(1, 4 * H))
    b1 = gscale((params["b_ih_l1"] + params["b_hh_l1"]).reshape(1, 4 * H))

    zero_blk = jnp.zeros((H, 4 * H), jnp.float32)
    wx_pad = jnp.concatenate([W0ih, zero_blk], axis=1)                # (H, 8H)
    wh0_cmb = jnp.concatenate([W0hh, W1ih], axis=1)                   # (H, 8H)
    wh1_pad = jnp.concatenate([zero_blk, W1hh], axis=1)               # (H, 8H)
    b_pad = jnp.concatenate([b0, b1], axis=1)                         # (1, 8H)

    # Output Linear(H, 1) as a row (used as VPU multiply + lane reduce in-kernel).
    w_out_k = params["output_w"].reshape(1, H)                        # (1, H)
    b_out_k = params["output_b"].reshape(1, 1)                        # (1, 1)

    # One extra zero input row: iteration t needs xg_all[t+1] (its layer-1 half
    # is just b1; the phantom layer-0 gates of the last row are discarded).
    x_ext = jnp.concatenate([inputs, jnp.zeros((1, 1), jnp.float32)], axis=0)

    vmem = pl.BlockSpec(memory_space=pltpu.MemorySpace.VMEM)
    out, h_n, c_n = pl.pallas_call(
        simple_rnn_kernel,
        out_shape=(
            jax.ShapeDtypeStruct((steps, 1), jnp.float32),
            jax.ShapeDtypeStruct((2, 1, H), jnp.float32),
            jax.ShapeDtypeStruct((2, 1, H), jnp.float32),
        ),
        in_specs=[vmem] * 9,
        out_specs=(vmem, vmem, vmem),
    )(x_ext, w_in_k, b_in_k, wx_pad, b_pad, wh0_cmb, wh1_pad, w_out_k, b_out_k)

    return out.reshape(steps, 1, 1), (h_n, c_n)


# ----------------------------------------------------------------------------
# Pure-JAX reference (mirrors the PyTorch forward, eval mode) for verification.
# ----------------------------------------------------------------------------
def reference_forward(inputs, params):
    H = params["hidden_size"]
    steps = inputs.shape[0]
    sig = jax.nn.sigmoid

    def cell(x, h, c, W_ih, W_hh, b_ih, b_hh):
        gates = x @ W_ih.T + h @ W_hh.T + b_ih + b_hh
        i = sig(gates[:, 0 * H:1 * H]); f = sig(gates[:, 1 * H:2 * H])
        g = jnp.tanh(gates[:, 2 * H:3 * H]); o = sig(gates[:, 3 * H:4 * H])
        c = f * c + i * g
        return o * jnp.tanh(c), c

    h = [jnp.zeros((1, H), jnp.float32) for _ in range(2)]
    c = [jnp.zeros((1, H), jnp.float32) for _ in range(2)]
    outs = []
    for t in range(steps):
        x = inputs[t].reshape(1, 1)
        x = x @ params["input_w"].T + params["input_b"]
        for l in range(2):
            h[l], c[l] = cell(x, h[l], c[l], params[f"w_ih_l{l}"], params[f"w_hh_l{l}"],
                              params[f"b_ih_l{l}"], params[f"b_hh_l{l}"])
            x = h[l]
        outs.append(x @ params["output_w"].T + params["output_b"])
    return jnp.stack(outs), (jnp.stack(h), jnp.stack(c))


def make_params(key, hidden_size):
    H = hidden_size
    ks = jax.random.split(key, 16)
    u = lambda k, shape, bound: jax.random.uniform(k, shape, jnp.float32, -bound, bound)
    params = {
        "hidden_size": H,
        "input_w": u(ks[0], (H, 1), 1.0),                  # nn.Linear(1, H)
        "input_b": u(ks[1], (H,), 1.0),
        "output_w": u(ks[2], (1, H), 1.0 / np.sqrt(H)),    # nn.Linear(H, 1)
        "output_b": u(ks[3], (1,), 1.0 / np.sqrt(H)),
    }
    b = 1.0 / np.sqrt(H)
    for l in range(2):
        params[f"w_ih_l{l}"] = u(ks[4 + 4 * l], (4 * H, H), b)
        params[f"w_hh_l{l}"] = u(ks[5 + 4 * l], (4 * H, H), b)
        params[f"b_ih_l{l}"] = u(ks[6 + 4 * l], (4 * H,), b)
        params[f"b_hh_l{l}"] = u(ks[7 + 4 * l], (4 * H,), b)
    return params


if __name__ == "__main__":
    hidden_size = 32
    steps = 8

    key = jax.random.PRNGKey(0)
    k_params, k_x = jax.random.split(key)
    params = make_params(k_params, hidden_size)
    inputs = jax.random.normal(k_x, (steps, 1), jnp.float32)

    outputs, (h_n, c_n) = simple_rnn_forward(inputs, params)
    jax.block_until_ready((outputs, h_n, c_n))

    ref_out, (ref_h, ref_c) = reference_forward(inputs, params)
    np.testing.assert_allclose(np.asarray(outputs), np.asarray(ref_out), rtol=1e-4, atol=1e-5)
    np.testing.assert_allclose(np.asarray(h_n), np.asarray(ref_h), rtol=1e-4, atol=1e-5)
    np.testing.assert_allclose(np.asarray(c_n), np.asarray(ref_c), rtol=1e-4, atol=1e-5)

    print("KERNEL_OK")
</pallas_src>

<mosaic_0001>
module attributes {stable_mosaic.version = 11 : i64} {
  func.func @simple_rnn_kernel(%arg0: memref<9x1xf32, #tpu.memory_space<vmem>>, %arg1: memref<1x32xf32, #tpu.memory_space<vmem>>, %arg2: memref<1x32xf32, #tpu.memory_space<vmem>>, %arg3: memref<32x256xf32, #tpu.memory_space<vmem>>, %arg4: memref<1x256xf32, #tpu.memory_space<vmem>>, %arg5: memref<32x256xf32, #tpu.memory_space<vmem>>, %arg6: memref<32x256xf32, #tpu.memory_space<vmem>>, %arg7: memref<1x32xf32, #tpu.memory_space<vmem>>, %arg8: memref<1x1xf32, #tpu.memory_space<vmem>>, %arg9: memref<8x1xf32, #tpu.memory_space<vmem>>, %arg10: memref<2x1x32xf32, #tpu.memory_space<vmem>>, %arg11: memref<2x1x32xf32, #tpu.memory_space<vmem>>) attributes {dimension_semantics = [], scalar_prefetch = 0 : i64, scratch_operands = 0 : i64, tpu.core_type = #tpu.core_type<tc>} {
    %c0 = arith.constant 0 : index
    %c0_0 = arith.constant 0 : index
    %0 = vector.load %arg0[%c0, %c0_0] : memref<9x1xf32, #tpu.memory_space<vmem>>, vector<9x1xf32>
    %c0_1 = arith.constant 0 : index
    %c0_2 = arith.constant 0 : index
    %1 = vector.load %arg1[%c0_1, %c0_2] : memref<1x32xf32, #tpu.memory_space<vmem>>, vector<1x32xf32>
    %2 = vector.broadcast %0 : vector<9x1xf32> to vector<9x32xf32>
    %3 = vector.broadcast %1 : vector<1x32xf32> to vector<9x32xf32>
    %4 = arith.mulf %2, %3 : vector<9x32xf32>
    %c0_3 = arith.constant 0 : index
    %c0_4 = arith.constant 0 : index
    %5 = vector.load %arg2[%c0_3, %c0_4] : memref<1x32xf32, #tpu.memory_space<vmem>>, vector<1x32xf32>
    %6 = vector.broadcast %5 : vector<1x32xf32> to vector<9x32xf32>
    %7 = arith.addf %4, %6 : vector<9x32xf32>
    %c0_5 = arith.constant 0 : index
    %c0_6 = arith.constant 0 : index
    %8 = vector.load %arg3[%c0_5, %c0_6] : memref<32x256xf32, #tpu.memory_space<vmem>>, vector<32x256xf32>
    %cst = arith.constant dense<0.000000e+00> : vector<9x256xf32>
    %9 = tpu.matmul %7, %8, %cst {dimension_numbers = #tpu.dot_dimension_numbers<[1], [0], [0], [1], [0, 0, 1, 1], [], []>} : vector<9x32xf32>, vector<32x256xf32>, vector<9x256xf32> -> vector<9x256xf32>
    %c0_7 = arith.constant 0 : index
    %c0_8 = arith.constant 0 : index
    %10 = vector.load %arg4[%c0_7, %c0_8] : memref<1x256xf32, #tpu.memory_space<vmem>>, vector<1x256xf32>
    %11 = vector.broadcast %10 : vector<1x256xf32> to vector<9x256xf32>
    %12 = arith.addf %9, %11 : vector<9x256xf32>
    %c0_9 = arith.constant 0 : index
    %c0_10 = arith.constant 0 : index
    %13 = vector.load %arg5[%c0_9, %c0_10] : memref<32x256xf32, #tpu.memory_space<vmem>>, vector<32x256xf32>
    %c0_11 = arith.constant 0 : index
    %c0_12 = arith.constant 0 : index
    %14 = vector.load %arg6[%c0_11, %c0_12] : memref<32x256xf32, #tpu.memory_space<vmem>>, vector<32x256xf32>
    %15 = vector.extract_strided_slice %12 {offsets = [0, 0], sizes = [1, 128], strides = [1, 1]} : vector<9x256xf32> to vector<1x128xf32>
    %16 = arith.negf %15 : vector<1x128xf32>
    %17 = math.exp %16 : vector<1x128xf32>
    %cst_13 = arith.constant 1.000000e+00 : f32
    %18 = vector.broadcast %cst_13 : f32 to vector<1x128xf32>
    %19 = arith.addf %18, %17 : vector<1x128xf32>
    %20 = arith.divf %18, %19 : vector<1x128xf32>
    %21 = vector.extract_strided_slice %20 {offsets = [0, 0], sizes = [1, 32], strides = [1, 1]} : vector<1x128xf32> to vector<1x32xf32>
    %22 = vector.extract_strided_slice %20 {offsets = [0, 64], sizes = [1, 32], strides = [1, 1]} : vector<1x128xf32> to vector<1x32xf32>
    %cst_14 = arith.constant 2.000000e+00 : f32
    %23 = vector.broadcast %cst_14 : f32 to vector<1x32xf32>
    %24 = arith.mulf %23, %22 : vector<1x32xf32>
    %cst_15 = arith.constant 1.000000e+00 : f32
    %25 = vector.broadcast %cst_15 : f32 to vector<1x32xf32>
    %26 = arith.subf %24, %25 : vector<1x32xf32>
    %27 = vector.extract_strided_slice %20 {offsets = [0, 96], sizes = [1, 32], strides = [1, 1]} : vector<1x128xf32> to vector<1x32xf32>
    %28 = arith.mulf %21, %26 : vector<1x32xf32>
    %29 = math.tanh %28 : vector<1x32xf32>
    %30 = arith.mulf %27, %29 : vector<1x32xf32>
    %cst_16 = arith.constant 0.000000e+00 : f32
    %31 = vector.broadcast %cst_16 : f32 to vector<1x32xf32>
    %cst_17 = arith.constant dense<0.000000e+00> : vector<1x256xf32>
    %32 = tpu.matmul %30, %13, %cst_17 {dimension_numbers = #tpu.dot_dimension_numbers<[1], [0], [0], [1], [0, 0, 1, 1], [], []>} : vector<1x32xf32>, vector<32x256xf32>, vector<1x256xf32> -> vector<1x256xf32>
    %33 = vector.extract_strided_slice %12 {offsets = [1, 0], sizes = [1, 256], strides = [1, 1]} : vector<9x256xf32> to vector<1x256xf32>
    %34 = arith.addf %32, %33 : vector<1x256xf32>
    %35 = arith.negf %34 : vector<1x256xf32>
    %36 = math.exp %35 : vector<1x256xf32>
    %cst_18 = arith.constant 1.000000e+00 : f32
    %37 = vector.broadcast %cst_18 : f32 to vector<1x256xf32>
    %38 = arith.addf %37, %36 : vector<1x256xf32>
    %39 = arith.divf %37, %38 : vector<1x256xf32>
    %40 = vector.extract_strided_slice %39 {offsets = [0, 128], sizes = [1, 32], strides = [1, 1]} : vector<1x256xf32> to vector<1x32xf32>
    %41 = vector.extract_strided_slice %39 {offsets = [0, 160], sizes = [1, 32], strides = [1, 1]} : vector<1x256xf32> to vector<1x32xf32>
    %42 = vector.extract_strided_slice %39 {offsets = [0, 192], sizes = [1, 32], strides = [1, 1]} : vector<1x256xf32> to vector<1x32xf32>
    %cst_19 = arith.constant 2.000000e+00 : f32
    %43 = vector.broadcast %cst_19 : f32 to vector<1x32xf32>
    %44 = arith.mulf %43, %42 : vector<1x32xf32>
    %cst_20 = arith.constant 1.000000e+00 : f32
    %45 = vector.broadcast %cst_20 : f32 to vector<1x32xf32>
    %46 = arith.subf %44, %45 : vector<1x32xf32>
    %47 = vector.extract_strided_slice %39 {offsets = [0, 224], sizes = [1, 32], strides = [1, 1]} : vector<1x256xf32> to vector<1x32xf32>
    %48 = arith.mulf %41, %31 : vector<1x32xf32>
    %49 = arith.mulf %40, %46 : vector<1x32xf32>
    %50 = arith.addf %48, %49 : vector<1x32xf32>
    %51 = math.tanh %50 : vector<1x32xf32>
    %52 = arith.mulf %47, %51 : vector<1x32xf32>
    %53 = vector.extract_strided_slice %39 {offsets = [0, 0], sizes = [1, 32], strides = [1, 1]} : vector<1x256xf32> to vector<1x32xf32>
    %54 = vector.extract_strided_slice %39 {offsets = [0, 32], sizes = [1, 32], strides = [1, 1]} : vector<1x256xf32> to vector<1x32xf32>
    %55 = vector.extract_strided_slice %39 {offsets = [0, 64], sizes = [1, 32], strides = [1, 1]} : vector<1x256xf32> to vector<1x32xf32>
    %cst_21 = arith.constant 2.000000e+00 : f32
    %56 = vector.broadcast %cst_21 : f32 to vector<1x32xf32>
    %57 = arith.mulf %56, %55 : vector<1x32xf32>
    %cst_22 = arith.constant 1.000000e+00 : f32
    %58 = vector.broadcast %cst_22 : f32 to vector<1x32xf32>
    %59 = arith.subf %57, %58 : vector<1x32xf32>
    %60 = vector.extract_strided_slice %39 {offsets = [0, 96], sizes = [1, 32], strides = [1, 1]} : vector<1x256xf32> to vector<1x32xf32>
    %61 = arith.mulf %54, %28 : vector<1x32xf32>
    %62 = arith.mulf %53, %59 : vector<1x32xf32>
    %63 = arith.addf %61, %62 : vector<1x32xf32>
    %64 = math.tanh %63 : vector<1x32xf32>
    %65 = arith.mulf %60, %64 : vector<1x32xf32>
    %cst_23 = arith.constant dense<0.000000e+00> : vector<1x256xf32>
    %66 = tpu.matmul %65, %13, %cst_23 {dimension_numbers = #tpu.dot_dimension_numbers<[1], [0], [0], [1], [0, 0, 1, 1], [], []>} : vector<1x32xf32>, vector<32x256xf32>, vector<1x256xf32> -> vector<1x256xf32>
    %67 = vector.extract_strided_slice %12 {offsets = [2, 0], sizes = [1, 256], strides = [1, 1]} : vector<9x256xf32> to vector<1x256xf32>
    %68 = arith.addf %66, %67 : vector<1x256xf32>
    %cst_24 = arith.constant dense<0.000000e+00> : vector<1x256xf32>
    %69 = tpu.matmul %52, %14, %cst_24 {dimension_numbers = #tpu.dot_dimension_numbers<[1], [0], [0], [1], [0, 0, 1, 1], [], []>} : vector<1x32xf32>, vector<32x256xf32>, vector<1x256xf32> -> vector<1x256xf32>
    %70 = arith.addf %68, %69 : vector<1x256xf32>
    %71 = arith.negf %70 : vector<1x256xf32>
    %72 = math.exp %71 : vector<1x256xf32>
    %cst_25 = arith.constant 1.000000e+00 : f32
    %73 = vector.broadcast %cst_25 : f32 to vector<1x256xf32>
    %74 = arith.addf %73, %72 : vector<1x256xf32>
    %75 = arith.divf %73, %74 : vector<1x256xf32>
    %76 = vector.extract_strided_slice %75 {offsets = [0, 128], sizes = [1, 32], strides = [1, 1]} : vector<1x256xf32> to vector<1x32xf32>
    %77 = vector.extract_strided_slice %75 {offsets = [0, 160], sizes = [1, 32], strides = [1, 1]} : vector<1x256xf32> to vector<1x32xf32>
    %78 = vector.extract_strided_slice %75 {offsets = [0, 192], sizes = [1, 32], strides = [1, 1]} : vector<1x256xf32> to vector<1x32xf32>
    %cst_26 = arith.constant 2.000000e+00 : f32
    %79 = vector.broadcast %cst_26 : f32 to vector<1x32xf32>
    %80 = arith.mulf %79, %78 : vector<1x32xf32>
    %cst_27 = arith.constant 1.000000e+00 : f32
    %81 = vector.broadcast %cst_27 : f32 to vector<1x32xf32>
    %82 = arith.subf %80, %81 : vector<1x32xf32>
    %83 = vector.extract_strided_slice %75 {offsets = [0, 224], sizes = [1, 32], strides = [1, 1]} : vector<1x256xf32> to vector<1x32xf32>
    %84 = arith.mulf %77, %50 : vector<1x32xf32>
    %85 = arith.mulf %76, %82 : vector<1x32xf32>
    %86 = arith.addf %84, %85 : vector<1x32xf32>
    %87 = math.tanh %86 : vector<1x32xf32>
    %88 = arith.mulf %83, %87 : vector<1x32xf32>
    %89 = vector.extract_strided_slice %75 {offsets = [0, 0], sizes = [1, 32], strides = [1, 1]} : vector<1x256xf32> to vector<1x32xf32>
    %90 = vector.extract_strided_slice %75 {offsets = [0, 32], sizes = [1, 32], strides = [1, 1]} : vector<1x256xf32> to vector<1x32xf32>
    %91 = vector.extract_strided_slice %75 {offsets = [0, 64], sizes = [1, 32], strides = [1, 1]} : vector<1x256xf32> to vector<1x32xf32>
    %cst_28 = arith.constant 2.000000e+00 : f32
    %92 = vector.broadcast %cst_28 : f32 to vector<1x32xf32>
    %93 = arith.mulf %92, %91 : vector<1x32xf32>
    %cst_29 = arith.constant 1.000000e+00 : f32
    %94 = vector.broadcast %cst_29 : f32 to vector<1x32xf32>
    %95 = arith.subf %93, %94 : vector<1x32xf32>
    %96 = vector.extract_strided_slice %75 {offsets = [0, 96], sizes = [1, 32], strides = [1, 1]} : vector<1x256xf32> to vector<1x32xf32>
    %97 = arith.mulf %90, %63 : vector<1x32xf32>
    %98 = arith.mulf %89, %95 : vector<1x32xf32>
    %99 = arith.addf %97, %98 : vector<1x32xf32>
    %100 = math.tanh %99 : vector<1x32xf32>
    %101 = arith.mulf %96, %100 : vector<1x32xf32>
    %cst_30 = arith.constant dense<0.000000e+00> : vector<1x256xf32>
    %102 = tpu.matmul %101, %13, %cst_30 {dimension_numbers = #tpu.dot_dimension_numbers<[1], [0], [0], [1], [0, 0, 1, 1], [], []>} : vector<1x32xf32>, vector<32x256xf32>, vector<1x256xf32> -> vector<1x256xf32>
    %103 = vector.extract_strided_slice %12 {offsets = [3, 0], sizes = [1, 256], strides = [1, 1]} : vector<9x256xf32> to vector<1x256xf32>
    %104 = arith.addf %102, %103 : vector<1x256xf32>
    %cst_31 = arith.constant dense<0.000000e+00> : vector<1x256xf32>
    %105 = tpu.matmul %88, %14, %cst_31 {dimension_numbers = #tpu.dot_dimension_numbers<[1], [0], [0], [1], [0, 0, 1, 1], [], []>} : vector<1x32xf32>, vector<32x256xf32>, vector<1x256xf32> -> vector<1x256xf32>
    %106 = arith.addf %104, %105 : vector<1x256xf32>
    %107 = arith.negf %106 : vector<1x256xf32>
    %108 = math.exp %107 : vector<1x256xf32>
    %cst_32 = arith.constant 1.000000e+00 : f32
    %109 = vector.broadcast %cst_32 : f32 to vector<1x256xf32>
    %110 = arith.addf %109, %108 : vector<1x256xf32>
    %111 = arith.divf %109, %110 : vector<1x256xf32>
    %112 = vector.extract_strided_slice %111 {offsets = [0, 128], sizes = [1, 32], strides = [1, 1]} : vector<1x256xf32> to vector<1x32xf32>
    %113 = vector.extract_strided_slice %111 {offsets = [0, 160], sizes = [1, 32], strides = [1, 1]} : vector<1x256xf32> to vector<1x32xf32>
    %114 = vector.extract_strided_slice %111 {offsets = [0, 192], sizes = [1, 32], strides = [1, 1]} : vector<1x256xf32> to vector<1x32xf32>
    %cst_33 = arith.constant 2.000000e+00 : f32
    %115 = vector.broadcast %cst_33 : f32 to vector<1x32xf32>
    %116 = arith.mulf %115, %114 : vector<1x32xf32>
    %cst_34 = arith.constant 1.000000e+00 : f32
    %117 = vector.broadcast %cst_34 : f32 to vector<1x32xf32>
    %118 = arith.subf %116, %117 : vector<1x32xf32>
    %119 = vector.extract_strided_slice %111 {offsets = [0, 224], sizes = [1, 32], strides = [1, 1]} : vector<1x256xf32> to vector<1x32xf32>
    %120 = arith.mulf %113, %86 : vector<1x32xf32>
    %121 = arith.mulf %112, %118 : vector<1x32xf32>
    %122 = arith.addf %120, %121 : vector<1x32xf32>
    %123 = math.tanh %122 : vector<1x32xf32>
    %124 = arith.mulf %119, %123 : vector<1x32xf32>
    %125 = vector.extract_strided_slice %111 {offsets = [0, 0], sizes = [1, 32], strides = [1, 1]} : vector<1x256xf32> to vector<1x32xf32>
    %126 = vector.extract_strided_slice %111 {offsets = [0, 32], sizes = [1, 32], strides = [1, 1]} : vector<1x256xf32> to vector<1x32xf32>
    %127 = vector.extract_strided_slice %111 {offsets = [0, 64], sizes = [1, 32], strides = [1, 1]} : vector<1x256xf32> to vector<1x32xf32>
    %cst_35 = arith.constant 2.000000e+00 : f32
    %128 = vector.broadcast %cst_35 : f32 to vector<1x32xf32>
    %129 = arith.mulf %128, %127 : vector<1x32xf32>
    %cst_36 = arith.constant 1.000000e+00 : f32
    %130 = vector.broadcast %cst_36 : f32 to vector<1x32xf32>
    %131 = arith.subf %129, %130 : vector<1x32xf32>
    %132 = vector.extract_strided_slice %111 {offsets = [0, 96], sizes = [1, 32], strides = [1, 1]} : vector<1x256xf32> to vector<1x32xf32>
    %133 = arith.mulf %126, %99 : vector<1x32xf32>
    %134 = arith.mulf %125, %131 : vector<1x32xf32>
    %135 = arith.addf %133, %134 : vector<1x32xf32>
    %136 = math.tanh %135 : vector<1x32xf32>
    %137 = arith.mulf %132, %136 : vector<1x32xf32>
    %cst_37 = arith.constant dense<0.000000e+00> : vector<1x256xf32>
    %138 = tpu.matmul %137, %13, %cst_37 {dimension_numbers = #tpu.dot_dimension_numbers<[1], [0], [0], [1], [0, 0, 1, 1], [], []>} : vector<1x32xf32>, vector<32x256xf32>, vector<1x256xf32> -> vector<1x256xf32>
    %139 = vector.extract_strided_slice %12 {offsets = [4, 0], sizes = [1, 256], strides = [1, 1]} : vector<9x256xf32> to vector<1x256xf32>
    %140 = arith.addf %138, %139 : vector<1x256xf32>
    %cst_38 = arith.constant dense<0.000000e+00> : vector<1x256xf32>
    %141 = tpu.matmul %124, %14, %cst_38 {dimension_numbers = #tpu.dot_dimension_numbers<[1], [0], [0], [1], [0, 0, 1, 1], [], []>} : vector<1x32xf32>, vector<32x256xf32>, vector<1x256xf32> -> vector<1x256xf32>
    %142 = arith.addf %140, %141 : vector<1x256xf32>
    %143 = arith.negf %142 : vector<1x256xf32>
    %144 = math.exp %143 : vector<1x256xf32>
    %cst_39 = arith.constant 1.000000e+00 : f32
    %145 = vector.broadcast %cst_39 : f32 to vector<1x256xf32>
    %146 = arith.addf %145, %144 : vector<1x256xf32>
    %147 = arith.divf %145, %146 : vector<1x256xf32>
    %148 = vector.extract_strided_slice %147 {offsets = [0, 128], sizes = [1, 32], strides = [1, 1]} : vector<1x256xf32> to vector<1x32xf32>
    %149 = vector.extract_strided_slice %147 {offsets = [0, 160], sizes = [1, 32], strides = [1, 1]} : vector<1x256xf32> to vector<1x32xf32>
    %150 = vector.extract_strided_slice %147 {offsets = [0, 192], sizes = [1, 32], strides = [1, 1]} : vector<1x256xf32> to vector<1x32xf32>
    %cst_40 = arith.constant 2.000000e+00 : f32
    %151 = vector.broadcast %cst_40 : f32 to vector<1x32xf32>
    %152 = arith.mulf %151, %150 : vector<1x32xf32>
    %cst_41 = arith.constant 1.000000e+00 : f32
    %153 = vector.broadcast %cst_41 : f32 to vector<1x32xf32>
    %154 = arith.subf %152, %153 : vector<1x32xf32>
    %155 = vector.extract_strided_slice %147 {offsets = [0, 224], sizes = [1, 32], strides = [1, 1]} : vector<1x256xf32> to vector<1x32xf32>
    %156 = arith.mulf %149, %122 : vector<1x32xf32>
    %157 = arith.mulf %148, %154 : vector<1x32xf32>
    %158 = arith.addf %156, %157 : vector<1x32xf32>
    %159 = math.tanh %158 : vector<1x32xf32>
    %160 = arith.mulf %155, %159 : vector<1x32xf32>
    %161 = vector.extract_strided_slice %147 {offsets = [0, 0], sizes = [1, 32], strides = [1, 1]} : vector<1x256xf32> to vector<1x32xf32>
    %162 = vector.extract_strided_slice %147 {offsets = [0, 32], sizes = [1, 32], strides = [1, 1]} : vector<1x256xf32> to vector<1x32xf32>
    %163 = vector.extract_strided_slice %147 {offsets = [0, 64], sizes = [1, 32], strides = [1, 1]} : vector<1x256xf32> to vector<1x32xf32>
    %cst_42 = arith.constant 2.000000e+00 : f32
    %164 = vector.broadcast %cst_42 : f32 to vector<1x32xf32>
    %165 = arith.mulf %164, %163 : vector<1x32xf32>
    %cst_43 = arith.constant 1.000000e+00 : f32
    %166 = vector.broadcast %cst_43 : f32 to vector<1x32xf32>
    %167 = arith.subf %165, %166 : vector<1x32xf32>
    %168 = vector.extract_strided_slice %147 {offsets = [0, 96], sizes = [1, 32], strides = [1, 1]} : vector<1x256xf32> to vector<1x32xf32>
    %169 = arith.mulf %162, %135 : vector<1x32xf32>
    %170 = arith.mulf %161, %167 : vector<1x32xf32>
    %171 = arith.addf %169, %170 : vector<1x32xf32>
    %172 = math.tanh %171 : vector<1x32xf32>
    %173 = arith.mulf %168, %172 : vector<1x32xf32>
    %cst_44 = arith.constant dense<0.000000e+00> : vector<1x256xf32>
    %174 = tpu.matmul %173, %13, %cst_44 {dimension_numbers = #tpu.dot_dimension_numbers<[1], [0], [0], [1], [0, 0, 1, 1], [], []>} : vector<1x32xf32>, vector<32x256xf32>, vector<1x256xf32> -> vector<1x256xf32>
    %175 = vector.extract_strided_slice %12 {offsets = [5, 0], sizes = [1, 256], strides = [1, 1]} : vector<9x256xf32> to vector<1x256xf32>
    %176 = arith.addf %174, %175 : vector<1x256xf32>
    %cst_45 = arith.constant dense<0.000000e+00> : vector<1x256xf32>
    %177 = tpu.matmul %160, %14, %cst_45 {dimension_numbers = #tpu.dot_dimension_numbers<[1], [0], [0], [1], [0, 0, 1, 1], [], []>} : vector<1x32xf32>, vector<32x256xf32>, vector<1x256xf32> -> vector<1x256xf32>
    %178 = arith.addf %176, %177 : vector<1x256xf32>
    %179 = arith.negf %178 : vector<1x256xf32>
    %180 = math.exp %179 : vector<1x256xf32>
    %cst_46 = arith.constant 1.000000e+00 : f32
    %181 = vector.broadcast %cst_46 : f32 to vector<1x256xf32>
    %182 = arith.addf %181, %180 : vector<1x256xf32>
    %183 = arith.divf %181, %182 : vector<1x256xf32>
    %184 = vector.extract_strided_slice %183 {offsets = [0, 128], sizes = [1, 32], strides = [1, 1]} : vector<1x256xf32> to vector<1x32xf32>
    %185 = vector.extract_strided_slice %183 {offsets = [0, 160], sizes = [1, 32], strides = [1, 1]} : vector<1x256xf32> to vector<1x32xf32>
    %186 = vector.extract_strided_slice %183 {offsets = [0, 192], sizes = [1, 32], strides = [1, 1]} : vector<1x256xf32> to vector<1x32xf32>
    %cst_47 = arith.constant 2.000000e+00 : f32
    %187 = vector.broadcast %cst_47 : f32 to vector<1x32xf32>
    %188 = arith.mulf %187, %186 : vector<1x32xf32>
    %cst_48 = arith.constant 1.000000e+00 : f32
    %189 = vector.broadcast %cst_48 : f32 to vector<1x32xf32>
    %190 = arith.subf %188, %189 : vector<1x32xf32>
    %191 = vector.extract_strided_slice %183 {offsets = [0, 224], sizes = [1, 32], strides = [1, 1]} : vector<1x256xf32> to vector<1x32xf32>
    %192 = arith.mulf %185, %158 : vector<1x32xf32>
    %193 = arith.mulf %184, %190 : vector<1x32xf32>
    %194 = arith.addf %192, %193 : vector<1x32xf32>
    %195 = math.tanh %194 : vector<1x32xf32>
    %196 = arith.mulf %191, %195 : vector<1x32xf32>
    %197 = vector.extract_strided_slice %183 {offsets = [0, 0], sizes = [1, 32], strides = [1, 1]} : vector<1x256xf32> to vector<1x32xf32>
    %198 = vector.extract_strided_slice %183 {offsets = [0, 32], sizes = [1, 32], strides = [1, 1]} : vector<1x256xf32> to vector<1x32xf32>
    %199 = vector.extract_strided_slice %183 {offsets = [0, 64], sizes = [1, 32], strides = [1, 1]} : vector<1x256xf32> to vector<1x32xf32>
    %cst_49 = arith.constant 2.000000e+00 : f32
    %200 = vector.broadcast %cst_49 : f32 to vector<1x32xf32>
    %201 = arith.mulf %200, %199 : vector<1x32xf32>
    %cst_50 = arith.constant 1.000000e+00 : f32
    %202 = vector.broadcast %cst_50 : f32 to vector<1x32xf32>
    %203 = arith.subf %201, %202 : vector<1x32xf32>
    %204 = vector.extract_strided_slice %183 {offsets = [0, 96], sizes = [1, 32], strides = [1, 1]} : vector<1x256xf32> to vector<1x32xf32>
    %205 = arith.mulf %198, %171 : vector<1x32xf32>
    %206 = arith.mulf %197, %203 : vector<1x32xf32>
    %207 = arith.addf %205, %206 : vector<1x32xf32>
    %208 = math.tanh %207 : vector<1x32xf32>
    %209 = arith.mulf %204, %208 : vector<1x32xf32>
    %cst_51 = arith.constant dense<0.000000e+00> : vector<1x256xf32>
    %210 = tpu.matmul %209, %13, %cst_51 {dimension_numbers = #tpu.dot_dimension_numbers<[1], [0], [0], [1], [0, 0, 1, 1], [], []>} : vector<1x32xf32>, vector<32x256xf32>, vector<1x256xf32> -> vector<1x256xf32>
    %211 = vector.extract_strided_slice %12 {offsets = [6, 0], sizes = [1, 256], strides = [1, 1]} : vector<9x256xf32> to vector<1x256xf32>
    %212 = arith.addf %210, %211 : vector<1x256xf32>
    %cst_52 = arith.constant dense<0.000000e+00> : vector<1x256xf32>
    %213 = tpu.matmul %196, %14, %cst_52 {dimension_numbers = #tpu.dot_dimension_numbers<[1], [0], [0], [1], [0, 0, 1, 1], [], []>} : vector<1x32xf32>, vector<32x256xf32>, vector<1x256xf32> -> vector<1x256xf32>
    %214 = arith.addf %212, %213 : vector<1x256xf32>
    %215 = arith.negf %214 : vector<1x256xf32>
    %216 = math.exp %215 : vector<1x256xf32>
    %cst_53 = arith.constant 1.000000e+00 : f32
    %217 = vector.broadcast %cst_53 : f32 to vector<1x256xf32>
    %218 = arith.addf %217, %216 : vector<1x256xf32>
    %219 = arith.divf %217, %218 : vector<1x256xf32>
    %220 = vector.extract_strided_slice %219 {offsets = [0, 128], sizes = [1, 32], strides = [1, 1]} : vector<1x256xf32> to vector<1x32xf32>
    %221 = vector.extract_strided_slice %219 {offsets = [0, 160], sizes = [1, 32], strides = [1, 1]} : vector<1x256xf32> to vector<1x32xf32>
    %222 = vector.extract_strided_slice %219 {offsets = [0, 192], sizes = [1, 32], strides = [1, 1]} : vector<1x256xf32> to vector<1x32xf32>
    %cst_54 = arith.constant 2.000000e+00 : f32
    %223 = vector.broadcast %cst_54 : f32 to vector<1x32xf32>
    %224 = arith.mulf %223, %222 : vector<1x32xf32>
    %cst_55 = arith.constant 1.000000e+00 : f32
    %225 = vector.broadcast %cst_55 : f32 to vector<1x32xf32>
    %226 = arith.subf %224, %225 : vector<1x32xf32>
    %227 = vector.extract_strided_slice %219 {offsets = [0, 224], sizes = [1, 32], strides = [1, 1]} : vector<1x256xf32> to vector<1x32xf32>
    %228 = arith.mulf %221, %194 : vector<1x32xf32>
    %229 = arith.mulf %220, %226 : vector<1x32xf32>
    %230 = arith.addf %228, %229 : vector<1x32xf32>
    %231 = math.tanh %230 : vector<1x32xf32>
    %232 = arith.mulf %227, %231 : vector<1x32xf32>
    %233 = vector.extract_strided_slice %219 {offsets = [0, 0], sizes = [1, 32], strides = [1, 1]} : vector<1x256xf32> to vector<1x32xf32>
    %234 = vector.extract_strided_slice %219 {offsets = [0, 32], sizes = [1, 32], strides = [1, 1]} : vector<1x256xf32> to vector<1x32xf32>
    %235 = vector.extract_strided_slice %219 {offsets = [0, 64], sizes = [1, 32], strides = [1, 1]} : vector<1x256xf32> to vector<1x32xf32>
    %cst_56 = arith.constant 2.000000e+00 : f32
    %236 = vector.broadcast %cst_56 : f32 to vector<1x32xf32>
    %237 = arith.mulf %236, %235 : vector<1x32xf32>
    %cst_57 = arith.constant 1.000000e+00 : f32
    %238 = vector.broadcast %cst_57 : f32 to vector<1x32xf32>
    %239 = arith.subf %237, %238 : vector<1x32xf32>
    %240 = vector.extract_strided_slice %219 {offsets = [0, 96], sizes = [1, 32], strides = [1, 1]} : vector<1x256xf32> to vector<1x32xf32>
    %241 = arith.mulf %234, %207 : vector<1x32xf32>
    %242 = arith.mulf %233, %239 : vector<1x32xf32>
    %243 = arith.addf %241, %242 : vector<1x32xf32>
    %244 = math.tanh %243 : vector<1x32xf32>
    %245 = arith.mulf %240, %244 : vector<1x32xf32>
    %cst_58 = arith.constant dense<0.000000e+00> : vector<1x256xf32>
    %246 = tpu.matmul %245, %13, %cst_58 {dimension_numbers = #tpu.dot_dimension_numbers<[1], [0], [0], [1], [0, 0, 1, 1], [], []>} : vector<1x32xf32>, vector<32x256xf32>, vector<1x256xf32> -> vector<1x256xf32>
    %247 = vector.extract_strided_slice %12 {offsets = [7, 0], sizes = [1, 256], strides = [1, 1]} : vector<9x256xf32> to vector<1x256xf32>
    %248 = arith.addf %246, %247 : vector<1x256xf32>
    %cst_59 = arith.constant dense<0.000000e+00> : vector<1x256xf32>
    %249 = tpu.matmul %232, %14, %cst_59 {dimension_numbers = #tpu.dot_dimension_numbers<[1], [0], [0], [1], [0, 0, 1, 1], [], []>} : vector<1x32xf32>, vector<32x256xf32>, vector<1x256xf32> -> vector<1x256xf32>
    %250 = arith.addf %248, %249 : vector<1x256xf32>
    %251 = arith.negf %250 : vector<1x256xf32>
    %252 = math.exp %251 : vector<1x256xf32>
    %cst_60 = arith.constant 1.000000e+00 : f32
    %253 = vector.broadcast %cst_60 : f32 to vector<1x256xf32>
    %254 = arith.addf %253, %252 : vector<1x256xf32>
    %255 = arith.divf %253, %254 : vector<1x256xf32>
    %256 = vector.extract_strided_slice %255 {offsets = [0, 128], sizes = [1, 32], strides = [1, 1]} : vector<1x256xf32> to vector<1x32xf32>
    %257 = vector.extract_strided_slice %255 {offsets = [0, 160], sizes = [1, 32], strides = [1, 1]} : vector<1x256xf32> to vector<1x32xf32>
    %258 = vector.extract_strided_slice %255 {offsets = [0, 192], sizes = [1, 32], strides = [1, 1]} : vector<1x256xf32> to vector<1x32xf32>
    %cst_61 = arith.constant 2.000000e+00 : f32
    %259 = vector.broadcast %cst_61 : f32 to vector<1x32xf32>
    %260 = arith.mulf %259, %258 : vector<1x32xf32>
    %cst_62 = arith.constant 1.000000e+00 : f32
    %261 = vector.broadcast %cst_62 : f32 to vector<1x32xf32>
    %262 = arith.subf %260, %261 : vector<1x32xf32>
    %263 = vector.extract_strided_slice %255 {offsets = [0, 224], sizes = [1, 32], strides = [1, 1]} : vector<1x256xf32> to vector<1x32xf32>
    %264 = arith.mulf %257, %230 : vector<1x32xf32>
    %265 = arith.mulf %256, %262 : vector<1x32xf32>
    %266 = arith.addf %264, %265 : vector<1x32xf32>
    %267 = math.tanh %266 : vector<1x32xf32>
    %268 = arith.mulf %263, %267 : vector<1x32xf32>
    %269 = vector.extract_strided_slice %255 {offsets = [0, 0], sizes = [1, 32], strides = [1, 1]} : vector<1x256xf32> to vector<1x32xf32>
    %270 = vector.extract_strided_slice %255 {offsets = [0, 32], sizes = [1, 32], strides = [1, 1]} : vector<1x256xf32> to vector<1x32xf32>
    %271 = vector.extract_strided_slice %255 {offsets = [0, 64], sizes = [1, 32], strides = [1, 1]} : vector<1x256xf32> to vector<1x32xf32>
    %cst_63 = arith.constant 2.000000e+00 : f32
    %272 = vector.broadcast %cst_63 : f32 to vector<1x32xf32>
    %273 = arith.mulf %272, %271 : vector<1x32xf32>
    %cst_64 = arith.constant 1.000000e+00 : f32
    %274 = vector.broadcast %cst_64 : f32 to vector<1x32xf32>
    %275 = arith.subf %273, %274 : vector<1x32xf32>
    %276 = vector.extract_strided_slice %255 {offsets = [0, 96], sizes = [1, 32], strides = [1, 1]} : vector<1x256xf32> to vector<1x32xf32>
    %277 = arith.mulf %270, %243 : vector<1x32xf32>
    %278 = arith.mulf %269, %275 : vector<1x32xf32>
    %279 = arith.addf %277, %278 : vector<1x32xf32>
    %280 = math.tanh %279 : vector<1x32xf32>
    %281 = arith.mulf %276, %280 : vector<1x32xf32>
    %cst_65 = arith.constant dense<0.000000e+00> : vector<1x256xf32>
    %282 = tpu.matmul %281, %13, %cst_65 {dimension_numbers = #tpu.dot_dimension_numbers<[1], [0], [0], [1], [0, 0, 1, 1], [], []>} : vector<1x32xf32>, vector<32x256xf32>, vector<1x256xf32> -> vector<1x256xf32>
    %283 = vector.extract_strided_slice %12 {offsets = [8, 0], sizes = [1, 256], strides = [1, 1]} : vector<9x256xf32> to vector<1x256xf32>
    %284 = arith.addf %282, %283 : vector<1x256xf32>
    %cst_66 = arith.constant dense<0.000000e+00> : vector<1x256xf32>
    %285 = tpu.matmul %268, %14, %cst_66 {dimension_numbers = #tpu.dot_dimension_numbers<[1], [0], [0], [1], [0, 0, 1, 1], [], []>} : vector<1x32xf32>, vector<32x256xf32>, vector<1x256xf32> -> vector<1x256xf32>
    %286 = arith.addf %284, %285 : vector<1x256xf32>
    %287 = arith.negf %286 : vector<1x256xf32>
    %288 = math.exp %287 : vector<1x256xf32>
    %cst_67 = arith.constant 1.000000e+00 : f32
    %289 = vector.broadcast %cst_67 : f32 to vector<1x256xf32>
    %290 = arith.addf %289, %288 : vector<1x256xf32>
    %291 = arith.divf %289, %290 : vector<1x256xf32>
    %292 = vector.extract_strided_slice %291 {offsets = [0, 128], sizes = [1, 32], strides = [1, 1]} : vector<1x256xf32> to vector<1x32xf32>
    %293 = vector.extract_strided_slice %291 {offsets = [0, 160], sizes = [1, 32], strides = [1, 1]} : vector<1x256xf32> to vector<1x32xf32>
    %294 = vector.extract_strided_slice %291 {offsets = [0, 192], sizes = [1, 32], strides = [1, 1]} : vector<1x256xf32> to vector<1x32xf32>
    %cst_68 = arith.constant 2.000000e+00 : f32
    %295 = vector.broadcast %cst_68 : f32 to vector<1x32xf32>
    %296 = arith.mulf %295, %294 : vector<1x32xf32>
    %cst_69 = arith.constant 1.000000e+00 : f32
    %297 = vector.broadcast %cst_69 : f32 to vector<1x32xf32>
    %298 = arith.subf %296, %297 : vector<1x32xf32>
    %299 = vector.extract_strided_slice %291 {offsets = [0, 224], sizes = [1, 32], strides = [1, 1]} : vector<1x256xf32> to vector<1x32xf32>
    %300 = arith.mulf %293, %266 : vector<1x32xf32>
    %301 = arith.mulf %292, %298 : vector<1x32xf32>
    %302 = arith.addf %300, %301 : vector<1x32xf32>
    %303 = math.tanh %302 : vector<1x32xf32>
    %304 = arith.mulf %299, %303 : vector<1x32xf32>
    %305 = tpu.concatenate %52, %88, %124, %160, %196, %232, %268, %304 in 0 : vector<1x32xf32>, vector<1x32xf32>, vector<1x32xf32>, vector<1x32xf32>, vector<1x32xf32>, vector<1x32xf32>, vector<1x32xf32>, vector<1x32xf32> -> vector<8x32xf32>
    %c0_70 = arith.constant 0 : index
    %c0_71 = arith.constant 0 : index
    %306 = vector.load %arg7[%c0_70, %c0_71] : memref<1x32xf32, #tpu.memory_space<vmem>>, vector<1x32xf32>
    %307 = vector.broadcast %306 : vector<1x32xf32> to vector<8x32xf32>
    %308 = arith.mulf %305, %307 : vector<8x32xf32>
    %cst_72 = arith.constant dense<0.000000e+00> : vector<8xf32>
    %309 = vector.multi_reduction <add>, %308, %cst_72 [1] : vector<8x32xf32> to vector<8xf32>
    %310 = vector.shape_cast %309 : vector<8xf32> to vector<8x1xf32>
    %c0_73 = arith.constant 0 : index
    %c0_74 = arith.constant 0 : index
    %311 = vector.load %arg8[%c0_73, %c0_74] : memref<1x1xf32, #tpu.memory_space<vmem>>, vector<1x1xf32>
    %312 = vector.broadcast %311 : vector<1x1xf32> to vector<8x1xf32>
    %313 = arith.addf %310, %312 : vector<8x1xf32>
    %c0_75 = arith.constant 0 : index
    %c0_76 = arith.constant 0 : index
    %314 = vector.load %arg9[%c0_75, %c0_76] : memref<8x1xf32, #tpu.memory_space<vmem>>, vector<8x1xf32>
    tpu.vector_store %arg9[%c0_75, %c0_76], %313 {strides = array<i32>} : memref<8x1xf32, #tpu.memory_space<vmem>>, vector<8x1xf32>,
    %c0_77 = arith.constant 0 : index
    %c0_78 = arith.constant 0 : index
    %c0_79 = arith.constant 0 : index
    %315 = vector.load %arg10[%c0_77, %c0_78, %c0_79] : memref<2x1x32xf32, #tpu.memory_space<vmem>>, vector<1x1x32xf32>
    %316 = vector.shape_cast %315 : vector<1x1x32xf32> to vector<1x32xf32>
    %317 = vector.shape_cast %281 : vector<1x32xf32> to vector<1x1x32xf32>
    tpu.vector_store %arg10[%c0_77, %c0_78, %c0_79], %317 {strides = array<i32>} : memref<2x1x32xf32, #tpu.memory_space<vmem>>, vector<1x1x32xf32>,
    %c1 = arith.constant 1 : index
    %c0_80 = arith.constant 0 : index
    %c0_81 = arith.constant 0 : index
    %318 = vector.load %arg10[%c1, %c0_80, %c0_81] : memref<2x1x32xf32, #tpu.memory_space<vmem>>, vector<1x1x32xf32>
    %319 = vector.shape_cast %318 : vector<1x1x32xf32> to vector<1x32xf32>
    %320 = vector.shape_cast %304 : vector<1x32xf32> to vector<1x1x32xf32>
    tpu.vector_store %arg10[%c1, %c0_80, %c0_81], %320 {strides = array<i32>} : memref<2x1x32xf32, #tpu.memory_space<vmem>>, vector<1x1x32xf32>,
    %c0_82 = arith.constant 0 : index
    %c0_83 = arith.constant 0 : index
    %c0_84 = arith.constant 0 : index
    %321 = vector.load %arg11[%c0_82, %c0_83, %c0_84] : memref<2x1x32xf32, #tpu.memory_space<vmem>>, vector<1x1x32xf32>
    %322 = vector.shape_cast %321 : vector<1x1x32xf32> to vector<1x32xf32>
    %323 = vector.shape_cast %279 : vector<1x32xf32> to vector<1x1x32xf32>
    tpu.vector_store %arg11[%c0_82, %c0_83, %c0_84], %323 {strides = array<i32>} : memref<2x1x32xf32, #tpu.memory_space<vmem>>, vector<1x1x32xf32>,
    %c1_85 = arith.constant 1 : index
    %c0_86 = arith.constant 0 : index
    %c0_87 = arith.constant 0 : index
    %324 = vector.load %arg11[%c1_85, %c0_86, %c0_87] : memref<2x1x32xf32, #tpu.memory_space<vmem>>, vector<1x1x32xf32>
    %325 = vector.shape_cast %324 : vector<1x1x32xf32> to vector<1x32xf32>
    %326 = vector.shape_cast %302 : vector<1x32xf32> to vector<1x1x32xf32>
    tpu.vector_store %arg11[%c1_85, %c0_86, %c0_87], %326 {strides = array<i32>} : memref<2x1x32xf32, #tpu.memory_space<vmem>>, vector<1x1x32xf32>,
    return
  }
}

</mosaic_0001>

<bundles_post_ra>
// kernel: tpu_custom_call.1
= control target key start
LH: loop header
LB: loop body
LE: loop exit
PB: predicated region body
PF: predicated region fallthrough
CT: control target
= control target key end

     0   :  { %s2786_s0 = inlined_call_operand.vmem [shape: f32[9,1], index: 0, kind: input, shape index: {}]   ;;  %s2787_s1 = inlined_call_operand.vmem [shape: f32[1,32], index: 1, kind: input, shape index: {}]   ;;  %s2788_s2 = inlined_call_operand.vmem [shape: f32[1,32], index: 2, kind: input, shape index: {}]   ;;  %s2789_s3 = inlined_call_operand.hbm [shape: f32[32,256], index: 3, kind: input, shape index: {}]   ;;  %s2790_s4 = inlined_call_operand.vmem [shape: f32[1,256], index: 4, kind: input, shape index: {}]   ;;  %s2791_s5 = inlined_call_operand.hbm [shape: f32[32,256], index: 5, kind: input, shape index: {}]   ;;  %s2792_s6 = inlined_call_operand.hbm [shape: f32[32,256], index: 6, kind: input, shape index: {}]   ;;  %s2793_s7 = inlined_call_operand.vmem [shape: f32[1,32], index: 7, kind: input, shape index: {}]   ;;  %s2794_s8 = inlined_call_operand.<no memory space> [shape: f32[1,1], index: 8, kind: input, shape index: {}]   ;;  %s2795_s9 = inlined_call_operand.vmem [shape: f32[8,1], index: 9, kind: output, shape index: {0}]   ;;  %s2796_s10 = inlined_call_operand.hbm [shape: f32[2,1,32], index: 10, kind: output, shape index: {1}]   ;;  %s2797_s11 = inlined_call_operand.hbm [shape: f32[2,1,32], index: 11, kind: output, shape index: {2}]  }
   0x1   :  { %v17_v0 = vstv %s2794_s8 }
   0x2   :  { %18 = vst [vmem:[#allocation2] sm:$0x1] %v17_v0 }
   0x3   :  { %19 = vsyncpa [#allocation4], 0 }
   0x4   :  { %20 = vsyncpa [#allocation7], 0 }
   0x5   :  { %21 = vsyncpa [#allocation5], 0 }
   0x6   :  { %22 = vsyncpa [#allocation11], 0  ;;  %s2359_s19 = smov [#allocation6]   ;;  %s2360_s21 = smov [#allocation3]  }
   0x7   :  { %s48_s20 = sshll.u32 %s2359_s19, 4  ;;  %s34_s22 = sshll.u32 %s2360_s21, 4  ;;  %s49_s20 = int_to_ptr.vmem [resolvable:$true] %s48_s20  ;;  %s2435_s22 = int_to_ptr.vmem [resolvable:$true] %s34_s22 }
   0x8   :  { %s2241_s25 = scalar_lea.hbm %s2791_s5, 1024 }
   0x9   :  { %p2242_p0 = scmp.ne.s32.totalorder %s2791_s5, %s2241_s25  ;;  %p2245_p1 = scmp.lt.u32.totalorder %s2241_s25, %s2791_s5 }
   0xb   :  { %p2247_p2 = pnand %p2245_p1, %p2242_p0 }
   0xd   :  { %2250 = shalt.err (!%p2247_p2)
}
   0xe   :  { %s2251_s29 = scalar_lea.vmem %s49_s20, 1024  ;;  %p2256_p4 = scmp.lt.s32.totalorder %s49_s20, %s49_s20 }
   0xf   :  { %p2252_p3 = scmp.ne.s32.totalorder %s49_s20, %s2251_s29  ;;  %p2257_p5 = scmp.lt.s32.totalorder %s2251_s29, %s2251_s29 }
  0x11   :  { %p2258_p6 = por %p2257_p5, %p2256_p4 }
  0x13   :  { %p2259_p7 = pnand %p2258_p6, %p2252_p3 }
  0x15   :  { %2262 = shalt.err (!%p2259_p7)
}
  0x16   :  { %s2361_s30 = smov 256   ;;  %s2362_s12 = smov 16  }
  0x17   :  { %54 = dma.hbm_to_vmem [thread:$0]  %s2791_s5, 1024, %s49_s20, [#allocation7], %s2361_s30, %s2361_s30, %s2362_s12  }
  0x18   :  { %s2263_s17 = scalar_lea.hbm %s2789_s3, 1024 }
  0x19   :  { %p2264_p8 = scmp.ne.s32.totalorder %s2789_s3, %s2263_s17  ;;  %p2267_p9 = scmp.lt.u32.totalorder %s2263_s17, %s2789_s3 }
  0x1b   :  { %p2269_p10 = pnand %p2267_p9, %p2264_p8 }
  0x1d   :  { %2272 = shalt.err (!%p2269_p10)
}
  0x1e   :  { %s2273_s24 = scalar_lea.vmem %s2435_s22, 1024  ;;  %p2278_p12 = scmp.lt.s32.totalorder %s2435_s22, %s2435_s22 }
  0x1f   :  { %p2274_p11 = scmp.ne.s32.totalorder %s2435_s22, %s2273_s24  ;;  %p2279_p13 = scmp.lt.s32.totalorder %s2273_s24, %s2273_s24 }
  0x21   :  { %p2280_p0 = por %p2279_p13, %p2278_p12 }
  0x23   :  { %p2281_p1 = pnand %p2280_p0, %p2274_p11 }
  0x25   :  { %2284 = shalt.err (!%p2281_p1)
}
  0x26   :  { %40 = dma.hbm_to_vmem [thread:$0]  %s2789_s3, 1024, %s2435_s22, [#allocation4], %s2361_s30, %s2361_s30, %s2362_s12  }
  0x27   :  { %s2363_s25 = smov [#allocation8]   ;;  %s2285_s28 = scalar_lea.hbm %s2792_s6, 1024 }
  0x28   :  { %s60_s26 = sshll.u32 %s2363_s25, 4  ;;  %p2286_p2 = scmp.ne.s32.totalorder %s2792_s6, %s2285_s28  ;;  %s61_s26 = int_to_ptr.vmem [resolvable:$true] %s60_s26 }
  0x29   :  { %p2289_p3 = scmp.lt.u32.totalorder %s2285_s28, %s2792_s6 }
  0x2b   :  { %p2291_p4 = pnand %p2289_p3, %p2286_p2 }
  0x2d   :  { %2294 = shalt.err (!%p2291_p4)
}
  0x2e   :  { %s2295_s16 = scalar_lea.vmem %s61_s26, 1024  ;;  %p2300_p6 = scmp.lt.s32.totalorder %s61_s26, %s61_s26 }
  0x2f   :  { %p2296_p5 = scmp.ne.s32.totalorder %s61_s26, %s2295_s16  ;;  %p2301_p7 = scmp.lt.s32.totalorder %s2295_s16, %s2295_s16 }
  0x31   :  { %p2302_p8 = por %p2301_p7, %p2300_p6 }
  0x33   :  { %p2303_p9 = pnand %p2302_p8, %p2296_p5 }
  0x35   :  { %2306 = shalt.err (!%p2303_p9)
}
  0x36   :  { %66 = dma.hbm_to_vmem [thread:$0]  %s2792_s6, 1024, %s61_s26, [#allocation7], %s2361_s30, %s2361_s30, %s2362_s12  }
  0x37   :  { %2351 = dma.done.wait [#allocation4], 1024  }
  0x38   :  { %2352 = vsyncadd [#allocation4], 4294966272 }
  0x39   :  { %2353 = dma.done.wait [#allocation7], 2048  }
  0x3a   :  { %2354 = vsyncadd [#allocation7], 4294965248  ;;  %v2364_v1 = vmov 0   ;;  %v80_v2 = vld [vmem:[%s2786_s0] sm:$0xff]  ;;  %v111_v3 = vld [vmem:[#allocation3 + $0x8] sm:$0xff]  ;;  %v2365_v15 = vmov 0.0   ;;  %v120_v21 = vlaneseq }
  0x3b   :  { %2143 = vset.pattern.permute.xlu0 %v2364_v1  ;;  %2144 = vset.pattern.permute.xlu1 %v2364_v1  ;;  %v113_v4 = vld [vmem:[#allocation3 + $0x18] sm:$0xff]  ;;  %v110_v6 = vld [vmem:[#allocation3] sm:$0xff]  ;;  %v112_v7 = vld [vmem:[#allocation3 + $0x10] sm:$0xff]  ;;  %vm130_vm0 = vcmask 261120   ;;  %vm1823_vm1 = vcmask 1040384   ;;  %vm1825_vm2 = vcmask 1041408  }
  0x3c   :  { %85 = vperm.xlu0 %2143, %v80_v2   ;;  %v1974_v5 = vpack.c.bf16 %v113_v4, %v111_v3  ;;  %v1976_v8 = vpack.c.bf16 %v112_v7, %v110_v6  ;;  %v115_v9 = vld [vmem:[#allocation3 + $0x28] sm:$0xff]  ;;  %v117_v10 = vld [vmem:[#allocation3 + $0x38] sm:$0xff]  ;;  %v114_v12 = vld [vmem:[#allocation3 + $0x20] sm:$0xff]  ;;  %201 = vmatprep.mubr.f32.mxu1 %v2365_v15  ;;  %v2500_v22 = vshrl.u32 %v120_v21, 7  ;;  %vm1827_vm3 = vcmask 1042432   ;;  %s2370_s27 = smov [#allocation10]  }
  0x3d   :  { %v1978_v11 = vpack.c.bf16 %v117_v10, %v115_v9  ;;  %v116_v13 = vld [vmem:[#allocation3 + $0x30] sm:$0xff]  ;;  %457 = vmatprep.mubr.f32.mxu0 %v2365_v15  ;;  %v1921_v16 = vld [vmem:[%s2787_s1] ss:$0 sm:$0xff]  ;;  %s2366_s1 = smov 64   ;;  %v81_v38 = vld [vmem:[%s2786_s0 + $0x8] sm:$0x1] }
  0x3e   :  { %1975 = vmatprep.subr.bf16.mxu1 %v1974_v5  ;;  %v1980_v14 = vpack.c.bf16 %v116_v13, %v114_v12  ;;  %v1922_v17 = vld [vmem:[%s2788_s2] ss:$0 sm:$0xff]  ;;  %v122_v23 = vsub.s32 0, %v2500_v22  ;;  %s2367_s2 = smov 96   ;;  %v214_v39 = vld [vmem:[#allocation6 + $0x8] sm:$0xff]  ;;  %v213_v41 = vld [vmem:[#allocation6] sm:$0xff] }
  0x3f   :  { %1977 = vmatpush1.bf16.msra.mxu1 %v1976_v8  ;;  %v118_v24 = vld [vmem:[%s2790_s4] sm:$0x3]  ;;  %v215_v43 = vld [vmem:[#allocation6 + $0x10] sm:$0xff]  ;;  %v218_v45 = vld [vmem:[#allocation6 + $0x28] sm:$0xff]  ;;  %s2368_s0 = smov 32   ;;  %v126_v59 = vsub.s32 1, %v2500_v22 }
  0x40   :  { %1979 = vmatprep.subr.bf16.mxu1 %v1978_v11  ;;  %v123_v25 = vrot.slane %v118_v24, %v122_v23  ;;  %v216_v40 = vld [vmem:[#allocation6 + $0x18] sm:$0xff]  ;;  %v2519_v44 = vpack.c.bf16 %v215_v43, %v213_v41  ;;  %v217_v47 = vld [vmem:[#allocation6 + $0x20] sm:$0xff]  ;;  %v219_v49 = vld [vmem:[#allocation6 + $0x30] sm:$0xff]  ;;  %vm1829_vm4 = vcmask 1043456   ;;  %vm1831_vm5 = vcmask 1044480   ;;  %s1902_s8 = sshll.u32 %s2370_s27, 4  ;;  %s1903_s8 = int_to_ptr.vmem [resolvable:$true] %s1902_s8 }
  0x41   :  { %v2517_v42 = vpack.c.bf16 %v216_v40, %v214_v39  ;;  %v220_v46 = vld [vmem:[#allocation6 + $0x38] sm:$0xff]  ;;  %v2526_v50 = vpack.c.bf16 %v219_v49, %v217_v47  ;;  %v2545_v60 = vrot.slane %v118_v24, %v126_v59  ;;  %v223_v39 = vld [vmem:[#allocation8 + $0x10] sm:$0xff]  ;;  %v226_v40 = vld [vmem:[#allocation8 + $0x28] sm:$0xff]  ;;  %vm1833_vm6 = vcmask 1045504  }
  0x42   :  { %v2522_v48 = vpack.c.bf16 %v220_v46, %v218_v45  ;;  %v228_v41 = vld [vmem:[#allocation8 + $0x38] sm:$0xff]  ;;  %v225_v46 = vld [vmem:[#allocation8 + $0x20] sm:$0xff]  ;;  %v227_v47 = vld [vmem:[#allocation8 + $0x30] sm:$0xff]  ;;  %vm1865_vm7 = vcmask 253952   ;;  %vm1835_vm8 = vcmask 1046528  }
  0x43   :  { %1981 = vmatpush1.bf16.msra.mxu1 %v1980_v14  ;;  %1991 = vmatprep.subr.bf16.mxu0 %v2517_v42  ;;  %v2577_v45 = vpack.c.bf16 %v228_v41, %v226_v40 }
  0x44   :  { %1983 = vmatprep.subr.bf16.mxu1 %v2517_v42  ;;  %1993 = vmatpush1.bf16.msra.mxu0 %v2519_v44 }
  0x45   :  { %1995 = vmatprep.subr.bf16.mxu0 %v2522_v48 }
  0x48   :  { %1997 = vmatpush1.bf16.msra.mxu0 %v2526_v50 }
  0xbb   :  { %v86_v18 = vpop.permute.xlu0 %85 }
  0xbc   :  { %v99_v19 = vmul.f32 %v1921_v16, %v86_v18 }
  0xbe   :  { %v108_v20 = vadd.f32 %v1922_v17, %v99_v19 }
  0xc0   :  { %1923 = vmatmul.mubr.msk.f32.vlgmr.msra.gmra.mrb[0].mxu1 %vm130_vm0, %v108_v20 }
  0xc1   :  { %207 = vmatprep.mubr.f32.mxu1 %v2365_v15  ;;  %1985 = vmatpush1.bf16.msra.mxu1 %v2519_v44 }
  0xc2   :  { %1987 = vmatprep.subr.bf16.mxu1 %v2522_v48 }
  0xc5   :  { %1989 = vmatpush1.bf16.msra.mxu1 %v2526_v50 }
  0xc6   :  { %2007 = vmatprep.subr.bf16.mxu1 %v2517_v42 }
 0x193   :  { %v203_v26 = vpop.f32.mrb[0].mxu1 }
 0x194   :  { %v2506_v27 = vadd.f32 %v203_v26, %v123_v25  ;;  %v205_v28 = vpop.f32.mrb[1].mxu1 }
 0x195   :  { %v2548_v61 = vadd.f32 %v205_v28, %v2545_v60 }
 0x196   :  { %v1925_v29 = vmul.f32 -1.442695, %v2506_v27  ;;  %v253_v62 = vrot.slane %v2506_v27, 1 }
 0x197   :  { %v254_v0 = vrot.slane %v2548_v61, 1 }
 0x198   :  { %2145 = vpow2.f32 %v1925_v29  ;;  %v222_v29 = vld [vmem:[#allocation8 + $0x8] sm:$0xff] }
 0x1a2   :  { %v2146_v30 = vpop.eup %2145 }
 0x1a3   :  { %v232_v31 = vadd.f32 1.0, %v2146_v30  ;;  %v224_v30 = vld [vmem:[#allocation8 + $0x18] sm:$0xff] }
 0x1a5   :  { %2147 = vrcp.f32 %v232_v31  ;;  %v2564_v31 = vpack.c.bf16 %v224_v30, %v222_v29  ;;  %v595_v30 = vrot.slane %v2506_v27, 3 }
 0x1a7   :  { %1999 = vmatprep.subr.bf16.mxu0 %v2564_v31 }
 0x1af   :  { %v2148_v32 = vpop.eup %2147 }
 0x1b0   :  { %v235_v33 = vmul.f32 2.0, %v2148_v32 }
 0x1b2   :  { %v1926_v34 = vadd.f32 -1.0, %v235_v33 }
 0x1b4   :  { %238 = vrot.lane.b32.xlu0 %v1926_v34, %s2366_s1 }
 0x226   :  { %v239_v35 = vpop.permute.xlu0 %238 }
 0x227   :  { %v2510_v36 = vmul.f32 %v2148_v32, %v239_v35 }
 0x229   :  { %2149 = vtanh.f32 %v2510_v36 }
 0x233   :  { %v2150_v37 = vpop.eup %2149 }
 0x234   :  { %244 = vrot.lane.b32.xlu1 %v2150_v37, %s2367_s2 }
 0x238   :  { %90 = vperm.xlu1 %2144, %v81_v38   ;;  %v221_v38 = vld [vmem:[#allocation8] sm:$0xff] }
 0x239   :  { %v2575_v43 = vpack.c.bf16 %v223_v39, %v221_v38 }
 0x2a6   :  { %v245_v51 = vpop.permute.xlu1 %244 }
 0x2a7   :  { %v247_v52 = vmul.f32 %v2148_v32, %v245_v51  ;;  %v2581_v51 = vpack.c.bf16 %v227_v47, %v225_v46 }
 0x2a9   :  { %249 = vrot.lane.b32.xlu0 %v247_v52, %s2368_s0 }
 0x2b7   :  { %v91_v53 = vpop.permute.xlu1 %90 }
 0x2b8   :  { %v100_v54 = vmul.f32 %v1921_v16, %v91_v53  ;;  %v387_v53 = vrot.slane %v2506_v27, 2 }
 0x2ba   :  { %v109_v55 = vadd.f32 %v1922_v17, %v100_v54 }
 0x2bc   :  { %1924 = vmatmul.mubr.msk.f32.gmra.mrb[2].mxu1 %vm130_vm0, %v109_v55  ;;  %v388_v55 = vrot.slane %v2548_v61, 2 }
 0x2bd   :  { %323 = vmatprep.mubr.f32.mxu1 %v2365_v15 }
 0x31b   :  { %v250_v56 = vpop.permute.xlu0 %249 }
 0x31c   :  { %1927 = vmatmul.mubr.msk.f32.vlgmr.msra.gmra.mrb[4].mxu1 %vm130_vm0, %v250_v56 }
 0x31d   :  { %2009 = vmatpush1.bf16.msra.mxu1 %v2519_v44  ;;  %665 = vmatprep.mubr.f32.mxu1 %v2365_v15 }
 0x31e   :  { %2011 = vmatprep.subr.bf16.mxu1 %v2522_v48 }
 0x321   :  { %2013 = vmatpush1.bf16.msra.mxu1 %v2526_v50 }
 0x322   :  { %2015 = vmatprep.subr.bf16.mxu1 %v2564_v31 }
 0x38f   :  { %v209_v57 = vpop.f32.mrb[2].mxu1 }
 0x390   :  { %v2542_v58 = vpop.f32.mrb[3].mxu1 }
 0x3ef   :  { %v325_v63 = vpop.f32.mrb[4].mxu1 }
 0x3f0   :  { %v326_v1 = vadd.f32 %v325_v63, %v253_v62  ;;  %v327_v2 = vpop.f32.mrb[5].mxu1 }
 0x3f1   :  { %v328_v3 = vadd.f32 %v327_v2, %v254_v0 }
 0x3f2   :  { %v1928_v4 = vmul.f32 -1.442695, %v326_v1 }
 0x3f3   :  { %v1929_v5 = vmul.f32 -1.442695, %v328_v3 }
 0x3f4   :  { %2151 = vpow2.f32 %v1928_v4 }
 0x3f5   :  { %2153 = vpow2.f32 %v1929_v5 }
 0x3fe   :  { %v2152_v6 = vpop.eup %2151 }
 0x3ff   :  { %v2154_v7 = vpop.eup %2153  ;;  %v336_v8 = vadd.f32 1.0, %v2152_v6 }
 0x400   :  { %v337_v9 = vadd.f32 1.0, %v2154_v7 }
 0x401   :  { %2155 = vrcp.f32 %v336_v8 }
 0x402   :  { %2157 = vrcp.f32 %v337_v9 }
 0x40b   :  { %v2156_v10 = vpop.eup %2155 }
 0x40c   :  { %v2158_v11 = vpop.eup %2157  ;;  %v361_v12 = vmul.f32 2.0, %v2156_v10 }
 0x40d   :  { %v342_v13 = vmul.f32 2.0, %v2158_v11  ;;  %v344_v24 = vmul.f32 0.0, %v2158_v11 }
 0x40e   :  { %v1931_v14 = vadd.f32 -1.0, %v361_v12 }
 0x40f   :  { %v1930_v16 = vadd.f32 -1.0, %v342_v13 }
 0x410   :  { %369 = vrot.lane.b32.xlu1 %v1931_v14, %s2366_s1 }
 0x411   :  { %346 = vrot.lane.b32.xlu0 %v1930_v16, %s2366_s1 }
 0x414   :  { %364 = vrot.lane.b32.xlu1 %v2510_v36, %s2368_s0 }
 0x482   :  { %v370_v17 = vpop.permute.xlu1 %369 }
 0x483   :  { %v372_v18 = vmul.f32 %v2156_v10, %v370_v17  ;;  %v347_v19 = vpop.permute.xlu0 %346 }
 0x484   :  { %v349_v20 = vmul.f32 %v2158_v11, %v347_v19 }
 0x485   :  { %374 = vrot.lane.b32.xlu0 %v372_v18, %s2368_s0 }
 0x486   :  { %351 = vrot.lane.b32.xlu1 %v349_v20, %s2368_s0  ;;  %v365_v21 = vpop.permute.xlu1 %364 }
 0x487   :  { %v367_v22 = vmul.f32 %v2156_v10, %v365_v21 }
 0x4f7   :  { %v375_v23 = vpop.permute.xlu0 %374 }
 0x4f8   :  { %v2558_v25 = vadd.f32 %v375_v23, %v367_v22  ;;  %v352_v26 = vpop.permute.xlu1 %351 }
 0x4f9   :  { %v2560_v28 = vadd.f32 %v352_v26, %v344_v24 }
 0x4fa   :  { %2159 = vtanh.f32 %v2558_v25 }
 0x4fb   :  { %2161 = vtanh.f32 %v2560_v28 }
 0x504   :  { %v2160_v32 = vpop.eup %2159 }
 0x505   :  { %v2162_v33 = vpop.eup %2161  ;;  %380 = vrot.lane.b32.xlu0 %v2160_v32, %s2366_s1 }
 0x506   :  { %357 = vrot.lane.b32.xlu1 %v2162_v33, %s2366_s1  ;;  %v596_v33 = vrot.slane %v2548_v61, 3 }
 0x577   :  { %v381_v34 = vpop.permute.xlu0 %380 }
 0x578   :  { %v383_v35 = vmul.f32 %v2156_v10, %v381_v34  ;;  %v358_v36 = vpop.permute.xlu1 %357 }
 0x579   :  { %v2570_v37 = vmul.f32 %v2158_v11, %v358_v36 }
 0x57a   :  { %385 = vrot.lane.b32.xlu0 %v383_v35, %s2368_s0 }
 0x57b   :  { %465 = vrot.lane.b32.xlu1 %v2570_v37, %s2368_s0 }
 0x5ec   :  { %v386_v49 = vpop.permute.xlu0 %385 }
 0x5ed   :  { %1932 = vmatmul.mubr.msk.f32.vlgmr.msra.gmra.mrb[0].mxu0 %vm130_vm0, %v386_v49  ;;  %v466_v52 = vpop.permute.xlu1 %465 }
 0x5ee   :  { %2001 = vmatpush1.bf16.msra.mxu0 %v2575_v43  ;;  %533 = vmatprep.mubr.f32.mxu0 %v2365_v15 }
 0x5ef   :  { %2003 = vmatprep.subr.bf16.mxu0 %v2577_v45 }
 0x5f2   :  { %2005 = vmatpush1.bf16.msra.mxu0 %v2581_v51 }
 0x5f3   :  { %2023 = vmatprep.subr.bf16.mxu0 %v2517_v42 }
 0x5f5   :  { %1933 = vmatmul.mubr.msk.f32.vlgmr.msra.gmra.mrb[0].mxu0 %vm130_vm0, %v466_v52 }
 0x5f6   :  { %2025 = vmatpush1.bf16.msra.mxu0 %v2519_v44  ;;  %873 = vmatprep.mubr.f32.mxu0 %v2365_v15 }
 0x5f7   :  { %2027 = vmatprep.subr.bf16.mxu0 %v2522_v48 }
 0x5fa   :  { %2029 = vmatpush1.bf16.msra.mxu0 %v2526_v50 }
 0x5fb   :  { %2031 = vmatprep.subr.bf16.mxu0 %v2564_v31 }
 0x6c8   :  { %v535_v54 = vpop.f32.mrb[0].mxu0 }
 0x6c9   :  { %v2104_v56 = vadd.f32 %v535_v54, %v387_v53  ;;  %v537_v57 = vpop.f32.mrb[1].mxu0 }
 0x6ca   :  { %v2105_v59 = vadd.f32 %v537_v57, %v388_v55 }
 0x6cb   :  { %v1934_v62 = vmul.f32 -1.442695, %v2104_v56 }
 0x6cc   :  { %v1935_v63 = vmul.f32 -1.442695, %v2105_v59 }
 0x6cd   :  { %2163 = vpow2.f32 %v1934_v62 }
 0x6ce   :  { %2165 = vpow2.f32 %v1935_v63 }
 0x6d7   :  { %v2164_v0 = vpop.eup %2163 }
 0x6d8   :  { %v2166_v1 = vpop.eup %2165  ;;  %v548_v2 = vadd.f32 1.0, %v2164_v0 }
 0x6d9   :  { %v549_v3 = vadd.f32 1.0, %v2166_v1 }
 0x6da   :  { %2167 = vrcp.f32 %v548_v2 }
 0x6db   :  { %2169 = vrcp.f32 %v549_v3 }
 0x6e4   :  { %v2168_v4 = vpop.eup %2167 }
 0x6e5   :  { %v2170_v5 = vpop.eup %2169  ;;  %v573_v6 = vmul.f32 2.0, %v2168_v4  ;;  %v575_v14 = vmul.f32 %v2168_v4, %v2558_v25 }
 0x6e6   :  { %v554_v7 = vmul.f32 2.0, %v2170_v5  ;;  %v556_v17 = vmul.f32 %v2170_v5, %v2560_v28 }
 0x6e7   :  { %v1937_v8 = vadd.f32 -1.0, %v573_v6 }
 0x6e8   :  { %v1936_v9 = vadd.f32 -1.0, %v554_v7 }
 0x6e9   :  { %577 = vrot.lane.b32.xlu0 %v1937_v8, %s2366_s1 }
 0x6ea   :  { %558 = vrot.lane.b32.xlu1 %v1936_v9, %s2366_s1 }
 0x75b   :  { %v578_v10 = vpop.permute.xlu0 %577 }
 0x75c   :  { %v580_v11 = vmul.f32 %v2168_v4, %v578_v10  ;;  %v559_v12 = vpop.permute.xlu1 %558 }
 0x75d   :  { %v561_v13 = vmul.f32 %v2170_v5, %v559_v12 }
 0x75e   :  { %582 = vrot.lane.b32.xlu0 %v580_v11, %s2368_s0 }
 0x75f   :  { %563 = vrot.lane.b32.xlu1 %v561_v13, %s2368_s0 }
 0x7d0   :  { %v583_v16 = vpop.permute.xlu0 %582 }
 0x7d1   :  { %v585_v18 = vadd.f32 %v583_v16, %v575_v14  ;;  %v564_v19 = vpop.permute.xlu1 %563 }
 0x7d2   :  { %v566_v20 = vadd.f32 %v564_v19, %v556_v17 }
 0x7d3   :  { %2171 = vtanh.f32 %v585_v18 }
 0x7d4   :  { %2173 = vtanh.f32 %v566_v20 }
 0x7dd   :  { %v2172_v21 = vpop.eup %2171 }
 0x7de   :  { %v2174_v22 = vpop.eup %2173  ;;  %588 = vrot.lane.b32.xlu0 %v2172_v21, %s2366_s1 }
 0x7df   :  { %569 = vrot.lane.b32.xlu1 %v2174_v22, %s2366_s1 }
 0x850   :  { %v589_v23 = vpop.permute.xlu0 %588 }
 0x851   :  { %v591_v24 = vmul.f32 %v2168_v4, %v589_v23  ;;  %v570_v26 = vpop.permute.xlu1 %569 }
 0x852   :  { %v2603_v29 = vmul.f32 %v2170_v5, %v570_v26 }
 0x853   :  { %593 = vrot.lane.b32.xlu0 %v591_v24, %s2368_s0 }
 0x854   :  { %673 = vrot.lane.b32.xlu1 %v2603_v29, %s2368_s0  ;;  %v1808_v9 = vrot.slane %v2603_v29, 7 }
 0x856   :  { %v1824_v14 = vsel %vm1823_vm1, %v2570_v37, %v1808_v9  ;;  %v803_v37 = vrot.slane %v2506_v27, 4 }
 0x8c5   :  { %v594_v25 = vpop.permute.xlu0 %593 }
 0x8c6   :  { %1938 = vmatmul.mubr.msk.f32.vlgmr.msra.gmra.mrb[6].mxu1 %vm130_vm0, %v594_v25  ;;  %v674_v28 = vpop.permute.xlu1 %673 }
 0x8c7   :  { %2017 = vmatpush1.bf16.msra.mxu1 %v2575_v43  ;;  %741 = vmatprep.mubr.f32.mxu1 %v2365_v15 }
 0x8c8   :  { %2019 = vmatprep.subr.bf16.mxu1 %v2577_v45 }
 0x8cb   :  { %2021 = vmatpush1.bf16.msra.mxu1 %v2581_v51 }
 0x8cc   :  { %2039 = vmatprep.subr.bf16.mxu1 %v2517_v42 }
 0x8ce   :  { %1939 = vmatmul.mubr.msk.f32.vlgmr.msra.gmra.mrb[6].mxu1 %vm130_vm0, %v674_v28 }
 0x8cf   :  { %2041 = vmatpush1.bf16.msra.mxu1 %v2519_v44  ;;  %1081 = vmatprep.mubr.f32.mxu1 %v2365_v15 }
 0x8d0   :  { %2043 = vmatprep.subr.bf16.mxu1 %v2522_v48 }
 0x8d3   :  { %2045 = vmatpush1.bf16.msra.mxu1 %v2526_v50 }
 0x8d4   :  { %2047 = vmatprep.subr.bf16.mxu1 %v2564_v31 }
 0x9a1   :  { %v743_v32 = vpop.f32.mrb[6].mxu1 }
 0x9a2   :  { %v2106_v34 = vadd.f32 %v743_v32, %v595_v30  ;;  %v745_v35 = vpop.f32.mrb[7].mxu1 }
 0x9a3   :  { %v2107_v36 = vadd.f32 %v745_v35, %v596_v33 }
 0x9a4   :  { %v1940_v38 = vmul.f32 -1.442695, %v2106_v34 }
 0x9a5   :  { %v1941_v39 = vmul.f32 -1.442695, %v2107_v36 }
 0x9a6   :  { %2175 = vpow2.f32 %v1940_v38 }
 0x9a7   :  { %2177 = vpow2.f32 %v1941_v39 }
 0x9b0   :  { %v2176_v40 = vpop.eup %2175 }
 0x9b1   :  { %v2178_v41 = vpop.eup %2177  ;;  %v756_v46 = vadd.f32 1.0, %v2176_v40 }
 0x9b2   :  { %v757_v47 = vadd.f32 1.0, %v2178_v41 }
 0x9b3   :  { %2179 = vrcp.f32 %v756_v46 }
 0x9b4   :  { %2181 = vrcp.f32 %v757_v47 }
 0x9bd   :  { %v2180_v49 = vpop.eup %2179 }
 0x9be   :  { %v2182_v52 = vpop.eup %2181  ;;  %v781_v53 = vmul.f32 2.0, %v2180_v49  ;;  %v783_v0 = vmul.f32 %v2180_v49, %v585_v18 }
 0x9bf   :  { %v762_v54 = vmul.f32 2.0, %v2182_v52  ;;  %v764_v2 = vmul.f32 %v2182_v52, %v566_v20  ;;  %v804_v20 = vrot.slane %v2548_v61, 4 }
 0x9c0   :  { %v1943_v55 = vadd.f32 -1.0, %v781_v53 }
 0x9c1   :  { %v1942_v56 = vadd.f32 -1.0, %v762_v54 }
 0x9c2   :  { %785 = vrot.lane.b32.xlu0 %v1943_v55, %s2366_s1 }
 0x9c3   :  { %766 = vrot.lane.b32.xlu1 %v1942_v56, %s2366_s1 }
 0xa34   :  { %v786_v57 = vpop.permute.xlu0 %785 }
 0xa35   :  { %v788_v59 = vmul.f32 %v2180_v49, %v786_v57  ;;  %v767_v62 = vpop.permute.xlu1 %766 }
 0xa36   :  { %v769_v63 = vmul.f32 %v2182_v52, %v767_v62 }
 0xa37   :  { %790 = vrot.lane.b32.xlu0 %v788_v59, %s2368_s0 }
 0xa38   :  { %771 = vrot.lane.b32.xlu1 %v769_v63, %s2368_s0 }
 0xaa9   :  { %v791_v1 = vpop.permute.xlu0 %790 }
 0xaaa   :  { %v2626_v3 = vadd.f32 %v791_v1, %v783_v0  ;;  %v772_v4 = vpop.permute.xlu1 %771 }
 0xaab   :  { %v2628_v5 = vadd.f32 %v772_v4, %v764_v2 }
 0xaac   :  { %2183 = vtanh.f32 %v2626_v3 }
 0xaad   :  { %2185 = vtanh.f32 %v2628_v5 }
 0xab6   :  { %v2184_v6 = vpop.eup %2183 }
 0xab7   :  { %v2186_v7 = vpop.eup %2185  ;;  %796 = vrot.lane.b32.xlu0 %v2184_v6, %s2366_s1 }
 0xab8   :  { %777 = vrot.lane.b32.xlu1 %v2186_v7, %s2366_s1  ;;  %v1012_v7 = vrot.slane %v2548_v61, 5 }
 0xb29   :  { %v797_v8 = vpop.permute.xlu0 %796 }
 0xb2a   :  { %v799_v10 = vmul.f32 %v2180_v49, %v797_v8  ;;  %v778_v11 = vpop.permute.xlu1 %777 }
 0xb2b   :  { %v780_v12 = vmul.f32 %v2182_v52, %v778_v11 }
 0xb2c   :  { %801 = vrot.lane.b32.xlu0 %v799_v10, %s2368_s0 }
 0xb2d   :  { %v1810_v13 = vrot.slane %v780_v12, 6  ;;  %881 = vrot.lane.b32.xlu1 %v780_v12, %s2368_s0 }
 0xb2f   :  { %v2638_v16 = vsel %vm1825_vm2, %v1824_v14, %v1810_v13 }
 0xb9e   :  { %v802_v17 = vpop.permute.xlu0 %801 }
 0xb9f   :  { %1944 = vmatmul.mubr.msk.f32.vlgmr.msra.gmra.mrb[2].mxu0 %vm130_vm0, %v802_v17  ;;  %v882_v18 = vpop.permute.xlu1 %881 }
 0xba0   :  { %2033 = vmatpush1.bf16.msra.mxu0 %v2575_v43  ;;  %949 = vmatprep.mubr.f32.mxu0 %v2365_v15 }
 0xba1   :  { %2035 = vmatprep.subr.bf16.mxu0 %v2577_v45 }
 0xba4   :  { %2037 = vmatpush1.bf16.msra.mxu0 %v2581_v51 }
 0xba5   :  { %2055 = vmatprep.subr.bf16.mxu0 %v2517_v42 }
 0xba7   :  { %1945 = vmatmul.mubr.msk.f32.vlgmr.msra.gmra.mrb[2].mxu0 %vm130_vm0, %v882_v18 }
 0xba8   :  { %2057 = vmatpush1.bf16.msra.mxu0 %v2519_v44  ;;  %1289 = vmatprep.mubr.f32.mxu0 %v2365_v15 }
 0xba9   :  { %2059 = vmatprep.subr.bf16.mxu0 %v2522_v48 }
 0xbac   :  { %2061 = vmatpush1.bf16.msra.mxu0 %v2526_v50 }
 0xbad   :  { %2063 = vmatprep.subr.bf16.mxu0 %v2564_v31 }
 0xc7a   :  { %v951_v19 = vpop.f32.mrb[2].mxu0 }
 0xc7b   :  { %v2108_v21 = vadd.f32 %v951_v19, %v803_v37  ;;  %v953_v22 = vpop.f32.mrb[3].mxu0 }
 0xc7c   :  { %v2109_v23 = vadd.f32 %v953_v22, %v804_v20 }
 0xc7d   :  { %v1946_v24 = vmul.f32 -1.442695, %v2108_v21 }
 0xc7e   :  { %v1947_v26 = vmul.f32 -1.442695, %v2109_v23 }
 0xc7f   :  { %2187 = vpow2.f32 %v1946_v24 }
 0xc80   :  { %2189 = vpow2.f32 %v1947_v26 }
 0xc89   :  { %v2188_v29 = vpop.eup %2187 }
 0xc8a   :  { %v2190_v25 = vpop.eup %2189  ;;  %v964_v28 = vadd.f32 1.0, %v2188_v29 }
 0xc8b   :  { %v965_v30 = vadd.f32 1.0, %v2190_v25 }
 0xc8c   :  { %2191 = vrcp.f32 %v964_v28 }
 0xc8d   :  { %2193 = vrcp.f32 %v965_v30 }
 0xc96   :  { %v2192_v32 = vpop.eup %2191 }
 0xc97   :  { %v2194_v33 = vpop.eup %2193  ;;  %v989_v34 = vmul.f32 2.0, %v2192_v32  ;;  %v991_v47 = vmul.f32 %v2192_v32, %v2626_v3 }
 0xc98   :  { %v970_v35 = vmul.f32 2.0, %v2194_v33  ;;  %v972_v52 = vmul.f32 %v2194_v33, %v2628_v5  ;;  %v1011_v5 = vrot.slane %v2506_v27, 5 }
 0xc99   :  { %v1949_v36 = vadd.f32 -1.0, %v989_v34 }
 0xc9a   :  { %v1948_v38 = vadd.f32 -1.0, %v970_v35 }
 0xc9b   :  { %993 = vrot.lane.b32.xlu0 %v1949_v36, %s2366_s1 }
 0xc9c   :  { %974 = vrot.lane.b32.xlu1 %v1948_v38, %s2366_s1 }
 0xd0d   :  { %v994_v39 = vpop.permute.xlu0 %993 }
 0xd0e   :  { %v996_v40 = vmul.f32 %v2192_v32, %v994_v39  ;;  %v975_v41 = vpop.permute.xlu1 %974 }
 0xd0f   :  { %v977_v46 = vmul.f32 %v2194_v33, %v975_v41 }
 0xd10   :  { %998 = vrot.lane.b32.xlu0 %v996_v40, %s2368_s0 }
 0xd11   :  { %979 = vrot.lane.b32.xlu1 %v977_v46, %s2368_s0 }
 0xd82   :  { %v999_v49 = vpop.permute.xlu0 %998 }
 0xd83   :  { %v1001_v53 = vadd.f32 %v999_v49, %v991_v47  ;;  %v980_v54 = vpop.permute.xlu1 %979 }
 0xd84   :  { %v982_v55 = vadd.f32 %v980_v54, %v972_v52 }
 0xd85   :  { %2195 = vtanh.f32 %v1001_v53 }
 0xd86   :  { %2197 = vtanh.f32 %v982_v55 }
 0xd8f   :  { %v2196_v56 = vpop.eup %2195 }
 0xd90   :  { %v2198_v57 = vpop.eup %2197  ;;  %1004 = vrot.lane.b32.xlu0 %v2196_v56, %s2366_s1 }
 0xd91   :  { %985 = vrot.lane.b32.xlu1 %v2198_v57, %s2366_s1 }
 0xe02   :  { %v1005_v59 = vpop.permute.xlu0 %1004 }
 0xe03   :  { %v1007_v62 = vmul.f32 %v2192_v32, %v1005_v59  ;;  %v986_v63 = vpop.permute.xlu1 %985 }
 0xe04   :  { %v988_v0 = vmul.f32 %v2194_v33, %v986_v63 }
 0xe05   :  { %1009 = vrot.lane.b32.xlu0 %v1007_v62, %s2368_s0 }
 0xe06   :  { %v1812_v1 = vrot.slane %v988_v0, 5  ;;  %1089 = vrot.lane.b32.xlu1 %v988_v0, %s2368_s0 }
 0xe08   :  { %v2665_v2 = vsel %vm1827_vm3, %v2638_v16, %v1812_v1 }
 0xe77   :  { %v1010_v3 = vpop.permute.xlu0 %1009 }
 0xe78   :  { %1950 = vmatmul.mubr.msk.f32.vlgmr.msra.gmra.mrb[8].mxu1 %vm130_vm0, %v1010_v3  ;;  %v1090_v4 = vpop.permute.xlu1 %1089 }
 0xe79   :  { %2049 = vmatpush1.bf16.msra.mxu1 %v2575_v43  ;;  %1157 = vmatprep.mubr.f32.mxu1 %v2365_v15 }
 0xe7a   :  { %2051 = vmatprep.subr.bf16.mxu1 %v2577_v45 }
 0xe7d   :  { %2053 = vmatpush1.bf16.msra.mxu1 %v2581_v51 }
 0xe7e   :  { %2071 = vmatprep.subr.bf16.mxu1 %v2517_v42 }
 0xe80   :  { %1951 = vmatmul.mubr.msk.f32.vlgmr.msra.gmra.mrb[8].mxu1 %vm130_vm0, %v1090_v4 }
 0xe81   :  { %2073 = vmatpush1.bf16.msra.mxu1 %v2519_v44  ;;  %1497 = vmatprep.mubr.f32.mxu1 %v2365_v15 }
 0xe82   :  { %2075 = vmatprep.subr.bf16.mxu1 %v2522_v48 }
 0xe85   :  { %2077 = vmatpush1.bf16.msra.mxu1 %v2526_v50 }
 0xe86   :  { %2079 = vmatprep.subr.bf16.mxu1 %v2564_v31 }
 0xf53   :  { %v1159_v6 = vpop.f32.mrb[8].mxu1 }
 0xf54   :  { %v2110_v8 = vadd.f32 %v1159_v6, %v1011_v5  ;;  %v1161_v9 = vpop.f32.mrb[9].mxu1 }
 0xf55   :  { %v2111_v10 = vadd.f32 %v1161_v9, %v1012_v7 }
 0xf56   :  { %v1952_v11 = vmul.f32 -1.442695, %v2110_v8 }
 0xf57   :  { %v1953_v12 = vmul.f32 -1.442695, %v2111_v10 }
 0xf58   :  { %2199 = vpow2.f32 %v1952_v11 }
 0xf59   :  { %2201 = vpow2.f32 %v1953_v12 }
 0xf62   :  { %v2200_v13 = vpop.eup %2199 }
 0xf63   :  { %v2202_v14 = vpop.eup %2201  ;;  %v1172_v16 = vadd.f32 1.0, %v2200_v13 }
 0xf64   :  { %v1173_v17 = vadd.f32 1.0, %v2202_v14 }
 0xf65   :  { %2203 = vrcp.f32 %v1172_v16 }
 0xf66   :  { %2205 = vrcp.f32 %v1173_v17 }
 0xf6f   :  { %v2204_v18 = vpop.eup %2203 }
 0xf70   :  { %v2206_v37 = vpop.eup %2205  ;;  %v1197_v19 = vmul.f32 2.0, %v2204_v18  ;;  %v1199_v25 = vmul.f32 %v2204_v18, %v1001_v53  ;;  %v1219_v53 = vrot.slane %v2506_v27, 6 }
 0xf71   :  { %v1178_v20 = vmul.f32 2.0, %v2206_v37  ;;  %v1180_v30 = vmul.f32 %v2206_v37, %v982_v55  ;;  %v1220_v55 = vrot.slane %v2548_v61, 6 }
 0xf72   :  { %v1955_v21 = vadd.f32 -1.0, %v1197_v19 }
 0xf73   :  { %v1954_v22 = vadd.f32 -1.0, %v1178_v20 }
 0xf74   :  { %1201 = vrot.lane.b32.xlu0 %v1955_v21, %s2366_s1 }
 0xf75   :  { %1182 = vrot.lane.b32.xlu1 %v1954_v22, %s2366_s1 }
 0xfe6   :  { %v1202_v23 = vpop.permute.xlu0 %1201 }
 0xfe7   :  { %v1204_v24 = vmul.f32 %v2204_v18, %v1202_v23  ;;  %v1183_v26 = vpop.permute.xlu1 %1182 }
 0xfe8   :  { %v1185_v29 = vmul.f32 %v2206_v37, %v1183_v26  ;;  %v1427_v26 = vrot.slane %v2506_v27, 7 }
 0xfe9   :  { %1206 = vrot.lane.b32.xlu0 %v1204_v24, %s2368_s0 }
 0xfea   :  { %1187 = vrot.lane.b32.xlu1 %v1185_v29, %s2368_s0 }
0x105b   :  { %v1207_v28 = vpop.permute.xlu0 %1206 }
0x105c   :  { %v1209_v32 = vadd.f32 %v1207_v28, %v1199_v25  ;;  %v1188_v33 = vpop.permute.xlu1 %1187  ;;  %v1428_v25 = vrot.slane %v2548_v61, 7 }
0x105d   :  { %v1190_v34 = vadd.f32 %v1188_v33, %v1180_v30 }
0x105e   :  { %2207 = vtanh.f32 %v1209_v32 }
0x105f   :  { %2209 = vtanh.f32 %v1190_v34 }
0x1068   :  { %v2208_v35 = vpop.eup %2207 }
0x1069   :  { %v2210_v36 = vpop.eup %2209  ;;  %1212 = vrot.lane.b32.xlu0 %v2208_v35, %s2366_s1 }
0x106a   :  { %1193 = vrot.lane.b32.xlu1 %v2210_v36, %s2366_s1 }
0x10db   :  { %v1213_v38 = vpop.permute.xlu0 %1212 }
0x10dc   :  { %v1215_v39 = vmul.f32 %v2204_v18, %v1213_v38  ;;  %v1194_v40 = vpop.permute.xlu1 %1193 }
0x10dd   :  { %v1196_v41 = vmul.f32 %v2206_v37, %v1194_v40 }
0x10de   :  { %1217 = vrot.lane.b32.xlu0 %v1215_v39, %s2368_s0 }
0x10df   :  { %v1814_v46 = vrot.slane %v1196_v41, 4  ;;  %1297 = vrot.lane.b32.xlu1 %v1196_v41, %s2368_s0 }
0x10e1   :  { %v2690_v47 = vsel %vm1829_vm4, %v2665_v2, %v1814_v46 }
0x1150   :  { %v1218_v49 = vpop.permute.xlu0 %1217 }
0x1151   :  { %1956 = vmatmul.mubr.msk.f32.vlgmr.msra.gmra.mrb[4].mxu0 %vm130_vm0, %v1218_v49  ;;  %v1298_v52 = vpop.permute.xlu1 %1297 }
0x1152   :  { %2065 = vmatpush1.bf16.msra.mxu0 %v2575_v43  ;;  %1365 = vmatprep.mubr.f32.mxu0 %v2365_v15 }
0x1153   :  { %2067 = vmatprep.subr.bf16.mxu0 %v2577_v45 }
0x1156   :  { %2069 = vmatpush1.bf16.msra.mxu0 %v2581_v51 }
0x1157   :  { %2087 = vmatprep.subr.bf16.mxu0 %v2517_v42 }
0x1159   :  { %1957 = vmatmul.mubr.msk.f32.vlgmr.msra.gmra.mrb[4].mxu0 %vm130_vm0, %v1298_v52 }
0x115a   :  { %2089 = vmatpush1.bf16.msra.mxu0 %v2519_v44  ;;  %1701 = vmatprep.mubr.f32.mxu0 %v2365_v15 }
0x115b   :  { %2091 = vmatprep.subr.bf16.mxu0 %v2522_v48 }
0x115e   :  { %2093 = vmatpush1.bf16.msra.mxu0 %v2526_v50 }
0x115f   :  { %2095 = vmatprep.subr.bf16.mxu0 %v2564_v31 }
0x122c   :  { %v1367_v54 = vpop.f32.mrb[4].mxu0 }
0x122d   :  { %v2112_v56 = vadd.f32 %v1367_v54, %v1219_v53  ;;  %v1369_v42 = vpop.f32.mrb[5].mxu0 }
0x122e   :  { %v2113_v57 = vadd.f32 %v1369_v42, %v1220_v55 }
0x122f   :  { %v1958_v59 = vmul.f32 -1.442695, %v2112_v56 }
0x1230   :  { %v1959_v62 = vmul.f32 -1.442695, %v2113_v57 }
0x1231   :  { %2211 = vpow2.f32 %v1958_v59 }
0x1232   :  { %2213 = vpow2.f32 %v1959_v62 }
0x123b   :  { %v2212_v44 = vpop.eup %2211 }
0x123c   :  { %v2214_v63 = vpop.eup %2213  ;;  %v1380_v0 = vadd.f32 1.0, %v2212_v44 }
0x123d   :  { %v1381_v48 = vadd.f32 1.0, %v2214_v63 }
0x123e   :  { %2215 = vrcp.f32 %v1380_v0 }
0x123f   :  { %2217 = vrcp.f32 %v1381_v48 }
0x1248   :  { %v2216_v50 = vpop.eup %2215 }
0x1249   :  { %v2218_v31 = vpop.eup %2217  ;;  %v1405_v1 = vmul.f32 2.0, %v2216_v50  ;;  %v1407_v9 = vmul.f32 %v2216_v50, %v1209_v32 }
0x124a   :  { %v1386_v2 = vmul.f32 2.0, %v2218_v31  ;;  %v1388_v11 = vmul.f32 %v2218_v31, %v1190_v34 }
0x124b   :  { %v1961_v3 = vadd.f32 -1.0, %v1405_v1 }
0x124c   :  { %v1960_v4 = vadd.f32 -1.0, %v1386_v2 }
0x124d   :  { %1409 = vrot.lane.b32.xlu0 %v1961_v3, %s2366_s1 }
0x124e   :  { %1390 = vrot.lane.b32.xlu1 %v1960_v4, %s2366_s1 }
0x12bf   :  { %v1410_v5 = vpop.permute.xlu0 %1409 }
0x12c0   :  { %v1412_v6 = vmul.f32 %v2216_v50, %v1410_v5  ;;  %v1391_v7 = vpop.permute.xlu1 %1390  ;;  %v211_v5 = vadd.f32 %v2542_v58, %v2545_v60  ;;  %v1972_v58 = vld [vmem:[%s2793_s7] ss:$0 sm:$0xff]  ;;  %s2369_s7 = smov [#allocation9]  }
0x12c1   :  { %v1393_v8 = vmul.f32 %v2218_v31, %v1391_v7  ;;  %s1890_s26 = sshll.u32 %s2369_s7, 4  ;;  %s1891_s26 = int_to_ptr.vmem [resolvable:$true] %s1890_s26 }
0x12c2   :  { %1414 = vrot.lane.b32.xlu0 %v1412_v6, %s2368_s0  ;;  %s2307_s28 = scalar_lea.vmem %s1891_s26, 32  ;;  %p2312_p11 = scmp.lt.s32.totalorder %s1891_s26, %s1891_s26 }
0x12c3   :  { %1395 = vrot.lane.b32.xlu1 %v1393_v8, %s2368_s0  ;;  %p2308_p10 = scmp.ne.s32.totalorder %s1891_s26, %s2307_s28  ;;  %p2313_p12 = scmp.lt.s32.totalorder %s2307_s28, %s2307_s28 }
0x12c5   :  { %p2314_p13 = por %p2313_p12, %p2312_p11 }
0x12c7   :  { %p2315_p0 = pnand %p2314_p13, %p2308_p10 }
0x1334   :  { %v1415_v10 = vpop.permute.xlu0 %1414 }
0x1335   :  { %v1417_v12 = vadd.f32 %v1415_v10, %v1407_v9  ;;  %v1396_v13 = vpop.permute.xlu1 %1395 }
0x1336   :  { %v1398_v14 = vadd.f32 %v1396_v13, %v1388_v11 }
0x1337   :  { %2219 = vtanh.f32 %v1417_v12 }
0x1338   :  { %2221 = vtanh.f32 %v1398_v14 }
0x1341   :  { %v2220_v16 = vpop.eup %2219 }
0x1342   :  { %v2222_v17 = vpop.eup %2221  ;;  %1420 = vrot.lane.b32.xlu0 %v2220_v16, %s2366_s1 }
0x1343   :  { %1401 = vrot.lane.b32.xlu1 %v2222_v17, %s2366_s1 }
0x13b4   :  { %v1421_v18 = vpop.permute.xlu0 %1420 }
0x13b5   :  { %v1423_v37 = vmul.f32 %v2216_v50, %v1421_v18  ;;  %v1402_v19 = vpop.permute.xlu1 %1401 }
0x13b6   :  { %v1404_v20 = vmul.f32 %v2218_v31, %v1402_v19 }
0x13b7   :  { %1425 = vrot.lane.b32.xlu0 %v1423_v37, %s2368_s0 }
0x13b8   :  { %v1816_v21 = vrot.slane %v1404_v20, 3  ;;  %1505 = vrot.lane.b32.xlu1 %v1404_v20, %s2368_s0 }
0x13ba   :  { %v1832_v22 = vsel %vm1831_vm5, %v2690_v47, %v1816_v21 }
0x1429   :  { %v1426_v23 = vpop.permute.xlu0 %1425 }
0x142a   :  { %1962 = vmatmul.mubr.msk.f32.vlgmr.msra.gmra.mrb[10].mxu1 %vm130_vm0, %v1426_v23  ;;  %v1506_v24 = vpop.permute.xlu1 %1505 }
0x142b   :  { %2081 = vmatpush1.bf16.msra.mxu1 %v2575_v43  ;;  %1573 = vmatprep.mubr.f32.mxu1 %v2365_v15 }
0x142c   :  { %2083 = vmatprep.subr.bf16.mxu1 %v2577_v45 }
0x142f   :  { %2085 = vmatpush1.bf16.msra.mxu1 %v2581_v51 }
0x1432   :  { %1963 = vmatmul.mubr.msk.f32.vlgmr.msra.gmra.mrb[10].mxu1 %vm130_vm0, %v1506_v24 }
0x1505   :  { %v1575_v29 = vpop.f32.mrb[10].mxu1 }
0x1506   :  { %v2114_v28 = vadd.f32 %v1575_v29, %v1427_v26  ;;  %v1577_v30 = vpop.f32.mrb[11].mxu1 }
0x1507   :  { %v2115_v32 = vadd.f32 %v1577_v30, %v1428_v25 }
0x1508   :  { %v1964_v33 = vmul.f32 -1.442695, %v2114_v28 }
0x1509   :  { %v1965_v34 = vmul.f32 -1.442695, %v2115_v32 }
0x150a   :  { %2223 = vpow2.f32 %v1964_v33 }
0x150b   :  { %2225 = vpow2.f32 %v1965_v34 }
0x1514   :  { %v2224_v35 = vpop.eup %2223 }
0x1515   :  { %v2226_v36 = vpop.eup %2225  ;;  %v1588_v38 = vadd.f32 1.0, %v2224_v35 }
0x1516   :  { %v1589_v39 = vadd.f32 1.0, %v2226_v36 }
0x1517   :  { %2227 = vrcp.f32 %v1588_v38 }
0x1518   :  { %2229 = vrcp.f32 %v1589_v39 }
0x1521   :  { %v2228_v40 = vpop.eup %2227 }
0x1522   :  { %v2230_v41 = vpop.eup %2229  ;;  %v1613_v46 = vmul.f32 2.0, %v2228_v40  ;;  %v1615_v55 = vmul.f32 %v2228_v40, %v1417_v12 }
0x1523   :  { %v1594_v27 = vmul.f32 2.0, %v2230_v41  ;;  %v1596_v42 = vmul.f32 %v2230_v41, %v1398_v14 }
0x1524   :  { %v1967_v47 = vadd.f32 -1.0, %v1613_v46 }
0x1525   :  { %v1966_v49 = vadd.f32 -1.0, %v1594_v27 }
0x1526   :  { %1617 = vrot.lane.b32.xlu0 %v1967_v47, %s2366_s1 }
0x1527   :  { %1598 = vrot.lane.b32.xlu1 %v1966_v49, %s2366_s1 }
0x1598   :  { %v1618_v61 = vpop.permute.xlu0 %1617 }
0x1599   :  { %v1620_v52 = vmul.f32 %v2228_v40, %v1618_v61  ;;  %v1599_v53 = vpop.permute.xlu1 %1598 }
0x159a   :  { %v1601_v54 = vmul.f32 %v2230_v41, %v1599_v53 }
0x159b   :  { %1622 = vrot.lane.b32.xlu0 %v1620_v52, %s2368_s0 }
0x159c   :  { %1603 = vrot.lane.b32.xlu1 %v1601_v54, %s2368_s0 }
0x160d   :  { %v1623_v56 = vpop.permute.xlu0 %1622 }
0x160e   :  { %v1625_v57 = vadd.f32 %v1623_v56, %v1615_v55  ;;  %v1604_v59 = vpop.permute.xlu1 %1603 }
0x160f   :  { %v1606_v62 = vadd.f32 %v1604_v59, %v1596_v42 }
0x1610   :  { %2231 = vtanh.f32 %v1625_v57 }
0x1611   :  { %2233 = vtanh.f32 %v1606_v62 }
0x161a   :  { %v2232_v44 = vpop.eup %2231 }
0x161b   :  { %v2234_v63 = vpop.eup %2233  ;;  %1628 = vrot.lane.b32.xlu0 %v2232_v44, %s2366_s1 }
0x161c   :  { %1609 = vrot.lane.b32.xlu1 %v2234_v63, %s2366_s1 }
0x168d   :  { %v1629_v0 = vpop.permute.xlu0 %1628 }
0x168e   :  { %v1631_v48 = vmul.f32 %v2228_v40, %v1629_v0  ;;  %v1610_v50 = vpop.permute.xlu1 %1609 }
0x168f   :  { %v1612_v31 = vmul.f32 %v2230_v41, %v1610_v50 }
0x1690   :  { %1633 = vrot.lane.b32.xlu0 %v1631_v48, %s2368_s0 }
0x1691   :  { %v1818_v1 = vrot.slane %v1612_v31, 2  ;;  %1708 = vrot.lane.b32.xlu1 %v1612_v31, %s2368_s0 }
0x1693   :  { %v1834_v2 = vsel %vm1833_vm6, %v1832_v22, %v1818_v1 }
0x1702   :  { %v1634_v3 = vpop.permute.xlu0 %1633 }
0x1703   :  { %1866 = vst.msk [vmem:[#allocation9] sm:$0x1] %vm1865_vm7, %v1634_v3  ;;  %1968 = vmatmul.mubr.msk.f32.vlgmr.msra.gmra.mrb[6].mxu0 %vm130_vm0, %v1634_v3  ;;  %v1709_v4 = vpop.permute.xlu1 %1708 }
0x1704   :  { %2097 = vmatpush1.bf16.msra.mxu0 %v2575_v43  ;;  %1776 = vmatprep.mubr.f32.mxu0 %v2365_v15 }
0x1705   :  { %2099 = vmatprep.subr.bf16.mxu0 %v2577_v45 }
0x1708   :  { %2101 = vmatpush1.bf16.msra.mxu0 %v2581_v51 }
0x170b   :  { %1969 = vmatmul.mubr.msk.f32.vlgmr.msra.gmra.mrb[6].mxu0 %vm130_vm0, %v1709_v4 }
0x17de   :  { %v1778_v6 = vpop.f32.mrb[6].mxu0 }
0x17df   :  { %v1779_v7 = vpop.f32.mrb[7].mxu0 }
0x17e0   :  { %v2103_v8 = vadd.f32 %v1779_v7, %v211_v5 }
0x17e2   :  { %v1970_v9 = vmul.f32 -1.442695, %v2103_v8 }
0x17e4   :  { %2235 = vpow2.f32 %v1970_v9 }
0x17ee   :  { %v2236_v10 = vpop.eup %2235 }
0x17ef   :  { %v1786_v11 = vadd.f32 1.0, %v2236_v10 }
0x17f1   :  { %2237 = vrcp.f32 %v1786_v11 }
0x17fb   :  { %v2238_v43 = vpop.eup %2237 }
0x17fc   :  { %v1789_v15 = vmul.f32 2.0, %v2238_v43  ;;  %v1791_v60 = vmul.f32 %v2238_v43, %v1606_v62 }
0x17fe   :  { %v1971_v12 = vadd.f32 -1.0, %v1789_v15 }
0x1800   :  { %1793 = vrot.lane.b32.xlu0 %v1971_v12, %s2366_s1 }
0x1872   :  { %v1794_v45 = vpop.permute.xlu0 %1793 }
0x1873   :  { %v1796_v51 = vmul.f32 %v2238_v43, %v1794_v45 }
0x1875   :  { %1798 = vrot.lane.b32.xlu1 %v1796_v51, %s2368_s0 }
0x1879   :  { %1843 = vrot.lane.b32.xlu1 %v1972_v58, %s2367_s2 }
0x18e7   :  { %v1799_v13 = vpop.permute.xlu1 %1798 }
0x18e8   :  { %v1801_v14 = vadd.f32 %v1799_v13, %v1791_v60 }
0x18ea   :  { %2239 = vtanh.f32 %v1801_v14 }
0x18eb   :  { %v1844_v19 = vpop.permute.xlu1 %1843 }
0x18f4   :  { %v2240_v16 = vpop.eup %2239 }
0x18f5   :  { %1804 = vrot.lane.b32.xlu0 %v2240_v16, %s2366_s1 }
0x1967   :  { %v1805_v17 = vpop.permute.xlu0 %1804 }
0x1968   :  { %v1807_v18 = vmul.f32 %v2238_v43, %v1805_v17 }
0x196a   :  { %v1821_v37 = vrot.slane %v1807_v18, 1 }
0x196c   :  { %v1836_v20 = vsel %vm1835_vm8, %v1834_v2, %v1821_v37 }
0x196d   :  { %v1846_v21 = vmul.f32 %v1844_v19, %v1836_v20 }
0x196f   :  { %1848 = vrot.lane.b32.xlu0 %v1846_v21, %s2368_s0 }
0x1973   :  { %1867 = vrot.lane.b32.xlu0 %v1807_v18, %s2368_s0 }
0x1977   :  { %1873 = vrot.lane.b32.xlu0 %v1625_v57, %s2367_s2 }
0x197b   :  { %1878 = vrot.lane.b32.xlu0 %v1801_v14, %s2367_s2 }
0x19e1   :  { %v1849_v22 = vpop.permute.xlu0 %1848 }
0x19e2   :  { %v1851_v23 = vsel %vm130_vm0, %v1849_v22, 0.0 }
0x19e3   :  { %1852 = vadd.xlane.f32.xlu1 %v1851_v23 }
0x19e5   :  { %v1868_v24 = vpop.permute.xlu0 %1867 }
0x19e6   :  { %1871 = vst.msk [vmem:[#allocation9 + $0x1] sm:$0x1] %vm1865_vm7, %v1868_v24 }
0x19e9   :  { %v1874_v26 = vpop.permute.xlu0 %1873 }
0x19ea   :  { %1876 = vst.msk [vmem:[#allocation10] sm:$0x1] %vm1865_vm7, %v1874_v26 }
0x19ed   :  { %v1879_v29 = vpop.permute.xlu0 %1878 }
0x19ee   :  { %1882 = vst.msk [vmem:[#allocation10 + $0x1] sm:$0x1] %vm1865_vm7, %v1879_v29 }
0x19ef   :  { %2318 = shalt.err (!%p2315_p0)
}
0x19f0   :  { %s2319_s14 = scalar_lea.hbm %s2796_s10, 32 }
0x19f1   :  { %p2320_p1 = scmp.ne.s32.totalorder %s2796_s10, %s2319_s14  ;;  %p2323_p2 = scmp.lt.u32.totalorder %s2319_s14, %s2796_s10 }
0x19f3   :  { %p2325_p3 = pnand %p2323_p2, %p2320_p1 }
0x19f5   :  { %2328 = shalt.err (!%p2325_p3)
}
0x19f6   :  { %s2371_s17 = smov 1   ;;  %s2329_s30 = scalar_lea.vmem %s1903_s8, 32 }
0x19f7   :  { %1896 = dma.vmem_to_hbm [thread:$0]  %s1891_s26, 32, %s2796_s10, [#allocation5], %s2362_s12, %s2362_s12, %s2371_s17  }
0x19f8   :  { %p2330_p4 = scmp.ne.s32.totalorder %s1903_s8, %s2329_s30  ;;  %p2334_p5 = scmp.lt.s32.totalorder %s1903_s8, %s1903_s8 }
0x19f9   :  { %p2335_p6 = scmp.lt.s32.totalorder %s2329_s30, %s2329_s30 }
0x19fb   :  { %p2336_p7 = por %p2335_p6, %p2334_p5 }
0x19fd   :  { %p2337_p8 = pnand %p2336_p7, %p2330_p4 }
0x19ff   :  { %2340 = shalt.err (!%p2337_p8)
}
0x1a00   :  { %s2341_s23 = scalar_lea.hbm %s2797_s11, 32 }
0x1a01   :  { %p2342_p9 = scmp.ne.s32.totalorder %s2797_s11, %s2341_s23  ;;  %p2345_p10 = scmp.lt.u32.totalorder %s2341_s23, %s2797_s11 }
0x1a03   :  { %p2347_p11 = pnand %p2345_p10, %p2342_p9 }
0x1a05   :  { %2350 = shalt.err (!%p2347_p11)
}
0x1a06   :  { %1908 = dma.vmem_to_hbm [thread:$0]  %s1903_s8, 32, %s2797_s11, [#allocation11], %s2362_s12, %s2362_s12, %s2371_s17   ;;  %v1973_v25 = vld [vmem:[#allocation2] ss:$0 sm:$0xff]  ;;  %vm1862_vm9 = vcmask 7168  }
0x1a70   :  { %v1853_v28 = vpop.xlane.xlu1 %1852 }
0x1a71   :  { %v1861_v30 = vadd.f32 %v1973_v25, %v1853_v28 }
0x1a73   :  { %1863 = vst.msk [vmem:[%s2795_s9] sm:$0xff] %vm1862_vm9, %v1861_v30 }
0x1a74   :  { %2355 = dma.done.wait [#allocation5], 32  }
0x1a75   :  { %2356 = vsyncadd [#allocation5], 4294967264 }
0x1a76   :  { %2357 = dma.done.wait [#allocation11], 32  }
0x1a77   :  { %2358 = vsyncadd [#allocation11], 4294967264 }
0x1a78   :  { %1917 = vsyncpa [#allocation4], 1 }
0x1a79   :  { %1918 = vsyncpa [#allocation7], 1 }
0x1a7a   :  { %1919 = vsyncpa [#allocation5], 1 }
0x1a7b   :  { %1920 = vsyncpa [#allocation11], 1 }

</bundles_post_ra>
